<compile_context>
chip_gen: v6e
topology: v6e:2x2x1
jax: 0.10.0
libtpu: 0.0.40
codegen_flags: <defaults>
</compile_context>

<pallas_src>
import jax
import jax.numpy as jnp
from jax.experimental import pallas as pl
from jax.experimental.pallas import tpu as pltpu


# ----------------------------------------------------------------------------
# Config (small synthetic sizes consistent with the module's __init__).
# ----------------------------------------------------------------------------
HIDDEN_DIM   = 32    # CONTEXT_HIDDEN_DIM
POOLING_DIM  = 64    # CONTEXT_POOLING_DIM
MLP_HEAD_DIM = 32    # ROI_BOX_HEAD.MLP_HEAD_DIM  (!= POOLING_DIM -> up_dim used)
NUM_OBJ_CLS  = 8     # ROI_BOX_HEAD.NUM_CLASSES
NUM_REL_CLS  = 16    # ROI_RELATION_HEAD.NUM_CLASSES

LANE = 128            # TPU lane width (output padded to this for dense stores)
MAX_TILE_ROWS = 1024  # upper bound on rel-row tile (perf review: 1024-2048)


def _round_up(x, m):
    return ((x + m - 1) // m) * m


def _cdiv(a, b):
    return -(-a // b)


# ----------------------------------------------------------------------------
# Fused kernel.
#
# Once (grid step 0, persistent VMEM scratch):
#   edge_rep = relu(post_emb(edge_ctx))                     (N_obj, 2H)
#   A        = edge_rep[:, :H] @ Wcat[:H] + b_cat           (N_obj, P)
#   B        = edge_rep[:, H:] @ Wcat[H:]                   (N_obj, P)
# Per row tile:
#   prod = one_hot(sub) @ A + one_hot(obj) @ B              (tile, P)
#   uf   = up_dim(union_features)                           (tile, P)
#   ctx  = ctx_compress(prod * uf)                          (tile, C_pad)
#   frq  = one_hot(frq_idx) @ freq_table                    (tile, C_pad)
#   out  = ctx + frq
# ----------------------------------------------------------------------------
def _vctree_fused_kernel(edge_ctx_ref, sub_ref, obj_ref, frq_ref, union_ref,
                         w_emb_ref, b_emb_ref,
                         w_cat_h_ref, w_cat_t_ref, b_cat_ref,
                         w_up_ref, b_up_ref,
                         w_ctx_ref, b_ctx_ref,
                         freq_tbl_ref,
                         o_ref,
                         a_sc, b_sc):
    h = w_emb_ref.shape[0]
    tile = sub_ref.shape[0]
    n_obj = a_sc.shape[0]
    n_pair = freq_tbl_ref.shape[0]

    # Hoisted once-per-call work (requires sequential "arbitrary" grid so the
    # scratch written at step 0 persists for every later step).
    @pl.when(pl.program_id(0) == 0)
    def _():
        edge_rep = jnp.maximum(
            jnp.dot(edge_ctx_ref[...], w_emb_ref[...],
                    preferred_element_type=jnp.float32) + b_emb_ref[...],
            0.0)
        # NOTE: padded object rows of edge_rep equal relu(b_emb), NOT zero;
        # harmless because valid pair indices never select them.
        a_sc[...] = (jnp.dot(edge_rep[:, :h], w_cat_h_ref[...],
                             preferred_element_type=jnp.float32)
                     + b_cat_ref[...])          # fold post_cat bias into A
        b_sc[...] = jnp.dot(edge_rep[:, h:], w_cat_t_ref[...],
                            preferred_element_type=jnp.float32)

    # One-hot gathers on the MXU (avoids dynamic-gather lowering, stays in
    # VMEM).  The iota is regenerated per step; acceptable while n_obj /
    # n_pair are tiny (see review note).
    col = jax.lax.broadcasted_iota(jnp.int32, (tile, n_obj), 1)
    sub_oh = (sub_ref[...] == col).astype(jnp.float32)
    obj_oh = (obj_ref[...] == col).astype(jnp.float32)
    prod = (jnp.dot(sub_oh, a_sc[...], preferred_element_type=jnp.float32)
            + jnp.dot(obj_oh, b_sc[...], preferred_element_type=jnp.float32))

    uf = (jnp.dot(union_ref[...], w_up_ref[...],
                  preferred_element_type=jnp.float32) + b_up_ref[...])

    ctx = (jnp.dot(prod * uf, w_ctx_ref[...],
                   preferred_element_type=jnp.float32) + b_ctx_ref[...])

    # Frequency-bias embedding lookup, also as a one-hot matmul.
    pcol = jax.lax.broadcasted_iota(jnp.int32, (tile, n_pair), 1)
    frq_oh = (frq_ref[...] == pcol).astype(jnp.float32)
    frq = jnp.dot(frq_oh, freq_tbl_ref[...], preferred_element_type=jnp.float32)

    # NOTE: padded rel rows (index 0) produce garbage here; they are sliced
    # off by the wrapper and must never be consumed downstream.
    o_ref[...] = ctx + frq


def vctree_rel_head(edge_ctx, union_features, sub_idx, obj_idx, frq_idx,
                    params, *, max_tile_rows=MAX_TILE_ROWS):
    """Fused relation head.  Returns rel_dists (R, NUM_REL_CLS) float32."""
    n_obj, h = edge_ctx.shape
    r, m = union_features.shape
    p = params["post_cat_w"].shape[1]
    c = params["ctx_w"].shape[1]
    n_pair = params["freq_table"].shape[0]

    # Row tiling: fewest tiles of <= max_tile_rows rows, each sized
    # ceil(R / num_tiles) rounded to 8 -> at most 7 padded rows per tile.
    r_eff = max(r, 1)
    num_tiles = _cdiv(r_eff, max_tile_rows)
    tile = _round_up(_cdiv(r_eff, num_tiles), 8)
    r_pad = tile * num_tiles
    n_obj_pad = _round_up(n_obj, 8)
    c_pad = _round_up(c, LANE)          # lane-dense output width

    f32 = jnp.float32
    edge_ctx_p = jnp.zeros((n_obj_pad, h), f32).at[:n_obj].set(edge_ctx)
    union_p = jnp.zeros((r_pad, m), f32).at[:r].set(union_features)
    sub_p = jnp.zeros((r_pad, 1), jnp.int32).at[:r, 0].set(sub_idx.astype(jnp.int32))
    obj_p = jnp.zeros((r_pad, 1), jnp.int32).at[:r, 0].set(obj_idx.astype(jnp.int32))
    frq_p = jnp.zeros((r_pad, 1), jnp.int32).at[:r, 0].set(frq_idx.astype(jnp.int32))

    w_cat_h = params["post_cat_w"][:h]
    w_cat_t = params["post_cat_w"][h:]
    w_ctx_p = jnp.zeros((p, c_pad), f32).at[:, :c].set(params["ctx_w"])
    b_ctx_p = jnp.zeros((1, c_pad), f32).at[0, :c].set(params["ctx_b"])
    freq_tbl_p = jnp.zeros((n_pair, c_pad), f32).at[:, :c].set(params["freq_table"])

    # ---- VMEM budget / cost estimate ------------------------------------
    const_elems = (n_obj_pad * h + h * 2 * h + 2 * h + 2 * h * p + p
                   + m * p + p + p * c_pad + c_pad + n_pair * c_pad)
    tile_elems = 3 * tile + tile * m + tile * c_pad
    scratch_elems = 2 * n_obj_pad * p
    footprint = 4 * (2 * const_elems + 2 * tile_elems + scratch_elems)
    vmem_limit = int(min(64 * 2**20, max(16 * 2**20, 4 * footprint)))

    flops = int(2 * n_obj_pad * h * (2 * h) + 2 * 2 * n_obj_pad * h * p
                + num_tiles * 2 * tile * (2 * n_obj_pad * p + m * p
                                          + p * c_pad + n_pair * c_pad))
    bytes_accessed = int(4 * (const_elems + 3 * r_pad + r_pad * m
                              + r_pad * c_pad))
    cost = pl.CostEstimate(flops=flops, transcendentals=0,
                           bytes_accessed=bytes_accessed)

    grid = (num_tiles,)

    def _const_spec(shape, single_buffer):
        idx = lambda i: (0,) * len(shape)
        if single_buffer:
            # Constant blocks never change -> single-buffer them to save VMEM.
            return pl.BlockSpec(shape, idx, pipeline_mode=pl.Buffered(1))
        return pl.BlockSpec(shape, idx)

    def _call(single_buffer_consts):
        cs = lambda shape: _const_spec(shape, single_buffer_consts)
        return pl.pallas_call(
            _vctree_fused_kernel,
            out_shape=jax.ShapeDtypeStruct((r_pad, c_pad), f32),
            grid_spec=pltpu.PrefetchScalarGridSpec(
                num_scalar_prefetch=0,
                grid=grid,
                in_specs=[
                    cs((n_obj_pad, h)),                        # edge_ctx (resident)
                    pl.BlockSpec((tile, 1), lambda i: (i, 0)),  # sub_idx
                    pl.BlockSpec((tile, 1), lambda i: (i, 0)),  # obj_idx
                    pl.BlockSpec((tile, 1), lambda i: (i, 0)),  # frq_idx
                    pl.BlockSpec((tile, m), lambda i: (i, 0)),  # union_features
                    cs((h, 2 * h)),                             # post_emb_w
                    cs((1, 2 * h)),                             # post_emb_b
                    cs((h, p)),                                 # post_cat_w (head)
                    cs((h, p)),                                 # post_cat_w (tail)
                    cs((1, p)),                                 # post_cat_b
                    cs((m, p)),                                 # up_w
                    cs((1, p)),                                 # up_b
                    cs((p, c_pad)),                             # ctx_w (lane-padded)
                    cs((1, c_pad)),                             # ctx_b (lane-padded)
                    cs((n_pair, c_pad)),                        # freq table (padded)
                ],
                out_specs=pl.BlockSpec((tile, c_pad), lambda i: (i, 0)),
                scratch_shapes=[pltpu.VMEM((n_obj_pad, p), f32),   # A
                                pltpu.VMEM((n_obj_pad, p), f32)],  # B
            ),
            compiler_params=pltpu.CompilerParams(
                # "arbitrary": sequential grid so the pid==0 scratch hoist is
                # seen by all later steps (see v7x TODO at top of file).
                dimension_semantics=("arbitrary",),
                vmem_limit_bytes=vmem_limit),
            cost_estimate=cost,
        )(edge_ctx_p, sub_p, obj_p, frq_p, union_p,
          params["post_emb_w"], params["post_emb_b"].reshape(1, 2 * h),
          w_cat_h, w_cat_t, params["post_cat_b"].reshape(1, p),
          params["up_w"], params["up_b"].reshape(1, p),
          w_ctx_p, b_ctx_p, freq_tbl_p)

    try:
        rel_pad = jax.block_until_ready(_call(True))
    except Exception:
        # pipeline_mode=pl.Buffered(1) not supported by this JAX build;
        # fall back to default (double-buffered) constants.
        rel_pad = jax.block_until_ready(_call(False))

    return rel_pad[:r, :c]


# ----------------------------------------------------------------------------
# Host-side glue (index arithmetic done with Python ints, no device sync).
# ----------------------------------------------------------------------------
def _build_pair_indices(num_objs, rel_pair_idxs, obj_preds):
    offsets = []
    acc = 0
    for n in num_objs:
        offsets.append(acc)
        acc += n
    sub_list, obj_list = [], []
    for off, pair_idx in zip(offsets, rel_pair_idxs):
        pair_idx = jnp.asarray(pair_idx, dtype=jnp.int32)
        sub_list.append(pair_idx[:, 0] + off)
        obj_list.append(pair_idx[:, 1] + off)
    sub_idx = jnp.concatenate(sub_list, axis=0)
    obj_idx = jnp.concatenate(obj_list, axis=0)
    obj_preds = obj_preds.astype(jnp.int32)
    frq_idx = (jnp.take(obj_preds, sub_idx) * NUM_OBJ_CLS
               + jnp.take(obj_preds, obj_idx))
    return sub_idx, obj_idx, frq_idx


def vctree_predictor_forward(num_objs, num_rels, rel_pair_idxs,
                             obj_dists, obj_preds, edge_ctx,
                             union_features, params):
    """Predictor part of VCTreePredictor.forward (context layer outputs given).

    Returns (obj_dists_split, rel_dists_split, add_losses)."""
    sub_idx, obj_idx, frq_idx = _build_pair_indices(
        num_objs, rel_pair_idxs, obj_preds)

    rel_dists = vctree_rel_head(edge_ctx, union_features,
                                sub_idx, obj_idx, frq_idx, params)

    obj_splits, rel_splits = [], []
    o_off = 0
    for n in num_objs:
        obj_splits.append(obj_dists[o_off:o_off + n])
        o_off += n
    r_off = 0
    for n in num_rels:
        rel_splits.append(rel_dists[r_off:r_off + n])
        r_off += n

    add_losses = {}
    return obj_splits, rel_splits, add_losses


# ----------------------------------------------------------------------------
# Parameter init (deterministic, mimics layer_init shapes/schemes).
# ----------------------------------------------------------------------------
def init_params(key):
    ks = jax.random.split(key, 6)

    def xavier(k, fan_in, fan_out):
        limit = jnp.sqrt(6.0 / (fan_in + fan_out))
        return jax.random.uniform(k, (fan_in, fan_out), jnp.float32,
                                  -limit, limit)

    params = {}
    params["post_emb_w"] = (10.0 * (1.0 / HIDDEN_DIM) ** 0.5) * \
        jax.random.normal(ks[0], (HIDDEN_DIM, 2 * HIDDEN_DIM), jnp.float32)
    params["post_emb_b"] = jnp.zeros((2 * HIDDEN_DIM,), jnp.float32)
    params["post_cat_w"] = xavier(ks[1], 2 * HIDDEN_DIM, POOLING_DIM)
    params["post_cat_b"] = jnp.zeros((POOLING_DIM,), jnp.float32)
    params["ctx_w"] = xavier(ks[2], POOLING_DIM, NUM_REL_CLS)
    params["ctx_b"] = jnp.zeros((NUM_REL_CLS,), jnp.float32)
    params["up_w"] = xavier(ks[3], MLP_HEAD_DIM, POOLING_DIM)
    params["up_b"] = jnp.zeros((POOLING_DIM,), jnp.float32)
    params["freq_table"] = 0.1 * jax.random.normal(
        ks[4], (NUM_OBJ_CLS * NUM_OBJ_CLS, NUM_REL_CLS), jnp.float32)
    return params


# ----------------------------------------------------------------------------
# Pure-JAX reference.
# ----------------------------------------------------------------------------
def _reference(edge_ctx, union_features, sub_idx, obj_idx, frq_idx, params):
    er = jnp.maximum(edge_ctx @ params["post_emb_w"] + params["post_emb_b"], 0.)
    head = er[:, :HIDDEN_DIM][sub_idx]
    tail = er[:, HIDDEN_DIM:][obj_idx]
    prod_cat = jnp.concatenate([head, tail], axis=-1)
    prod = prod_cat @ params["post_cat_w"] + params["post_cat_b"]
    uf = union_features @ params["up_w"] + params["up_b"]
    ctx = (prod * uf) @ params["ctx_w"] + params["ctx_b"]
    frq = params["freq_table"][frq_idx]
    return ctx + frq


if __name__ == "__main__":
    key = jax.random.PRNGKey(0)
    kp, k1, k2, k3, k4, k5, k6 = jax.random.split(key, 7)

    params = init_params(kp)

    # two "images" with ragged (non-multiple-of-8) counts to exercise padding
    num_objs = [5, 7]
    num_rels = [7, 6]
    n_obj_total = sum(num_objs)
    n_rel_total = sum(num_rels)

    rel_pair_idxs = [
        jax.random.randint(k1, (num_rels[0], 2), 0, num_objs[0], jnp.int32),
        jax.random.randint(k2, (num_rels[1], 2), 0, num_objs[1], jnp.int32),
    ]
    obj_dists = jax.random.normal(k3, (n_obj_total, NUM_OBJ_CLS), jnp.float32)
    obj_preds = jax.random.randint(k4, (n_obj_total,), 0, NUM_OBJ_CLS,
                                   jnp.int32)
    edge_ctx = jax.random.normal(k5, (n_obj_total, HIDDEN_DIM), jnp.float32)
    union_features = jax.random.normal(
        k6, (n_rel_total, MLP_HEAD_DIM), jnp.float32)

    obj_out, rel_out, add_losses = vctree_predictor_forward(
        num_objs, num_rels, rel_pair_idxs,
        obj_dists, obj_preds, edge_ctx, union_features, params)

    rel_full = jnp.concatenate(rel_out, axis=0)
    jax.block_until_ready(rel_full)

    # reference check
    sub_idx, obj_idx, frq_idx = _build_pair_indices(
        num_objs, rel_pair_idxs, obj_preds)
    rel_ref = _reference(edge_ctx, union_features, sub_idx, obj_idx, frq_idx,
                         params)

    assert rel_full.shape == (n_rel_total, NUM_REL_CLS)
    assert jnp.allclose(rel_full, rel_ref, atol=1e-3, rtol=1e-3), (
        float(jnp.max(jnp.abs(rel_full - rel_ref))))
    assert len(obj_out) == 2
    assert obj_out[0].shape == (num_objs[0], NUM_OBJ_CLS)
    assert obj_out[1].shape == (num_objs[1], NUM_OBJ_CLS)
    assert len(rel_out) == 2 and rel_out[0].shape == (num_rels[0], NUM_REL_CLS)
    assert add_losses == {}

    print("KERNEL_OK")
</pallas_src>

<mosaic_0001>
module attributes {stable_mosaic.version = 11 : i64} {
  func.func @_vctree_fused_kernel(%arg0: i32, %arg1: memref<16x32xf32, #tpu.memory_space<vmem>>, %arg2: memref<16x1xi32, #tpu.memory_space<vmem>>, %arg3: memref<16x1xi32, #tpu.memory_space<vmem>>, %arg4: memref<16x1xi32, #tpu.memory_space<vmem>>, %arg5: memref<16x32xf32, #tpu.memory_space<vmem>>, %arg6: memref<32x64xf32, #tpu.memory_space<vmem>>, %arg7: memref<1x64xf32, #tpu.memory_space<vmem>>, %arg8: memref<32x64xf32, #tpu.memory_space<vmem>>, %arg9: memref<32x64xf32, #tpu.memory_space<vmem>>, %arg10: memref<1x64xf32, #tpu.memory_space<vmem>>, %arg11: memref<32x64xf32, #tpu.memory_space<vmem>>, %arg12: memref<1x64xf32, #tpu.memory_space<vmem>>, %arg13: memref<64x128xf32, #tpu.memory_space<vmem>>, %arg14: memref<1x128xf32, #tpu.memory_space<vmem>>, %arg15: memref<64x128xf32, #tpu.memory_space<vmem>>, %arg16: memref<16x128xf32, #tpu.memory_space<vmem>>, %arg17: memref<16x64xf32, #tpu.memory_space<vmem>>, %arg18: memref<16x64xf32, #tpu.memory_space<vmem>>) attributes {dimension_semantics = [#tpu.dimension_semantics<arbitrary>], iteration_bounds = array<i64: 1>, scalar_prefetch = 0 : i64, scratch_operands = 2 : i64, tpu.core_type = #tpu.core_type<tc>, window_params = [{pipeline_mode = #tpu.pipeline_mode<synchronous>, transform_indices = @transform_0, window_bounds = array<i64: 16, 32>}, {transform_indices = @transform_1, window_bounds = array<i64: 16, 1>}, {transform_indices = @transform_2, window_bounds = array<i64: 16, 1>}, {transform_indices = @transform_3, window_bounds = array<i64: 16, 1>}, {transform_indices = @transform_4, window_bounds = array<i64: 16, 32>}, {pipeline_mode = #tpu.pipeline_mode<synchronous>, transform_indices = @transform_5, window_bounds = array<i64: 32, 64>}, {pipeline_mode = #tpu.pipeline_mode<synchronous>, transform_indices = @transform_6, window_bounds = array<i64: 1, 64>}, {pipeline_mode = #tpu.pipeline_mode<synchronous>, transform_indices = @transform_7, window_bounds = array<i64: 32, 64>}, {pipeline_mode = #tpu.pipeline_mode<synchronous>, transform_indices = @transform_8, window_bounds = array<i64: 32, 64>}, {pipeline_mode = #tpu.pipeline_mode<synchronous>, transform_indices = @transform_9, window_bounds = array<i64: 1, 64>}, {pipeline_mode = #tpu.pipeline_mode<synchronous>, transform_indices = @transform_10, window_bounds = array<i64: 32, 64>}, {pipeline_mode = #tpu.pipeline_mode<synchronous>, transform_indices = @transform_11, window_bounds = array<i64: 1, 64>}, {pipeline_mode = #tpu.pipeline_mode<synchronous>, transform_indices = @transform_12, window_bounds = array<i64: 64, 128>}, {pipeline_mode = #tpu.pipeline_mode<synchronous>, transform_indices = @transform_13, window_bounds = array<i64: 1, 128>}, {pipeline_mode = #tpu.pipeline_mode<synchronous>, transform_indices = @transform_14, window_bounds = array<i64: 64, 128>}, {transform_indices = @transform_15, window_bounds = array<i64: 16, 128>}]} {
    %c0_i32 = arith.constant 0 : i32
    %0 = arith.cmpi eq, %arg0, %c0_i32 : i32
    %1 = arith.extui %0 : i1 to i32
    %c0_i32_0 = arith.constant 0 : i32
    %2 = arith.cmpi ne, %1, %c0_i32_0 : i32
    scf.if %2 {
      %c0_28 = arith.constant 0 : index
      %c0_29 = arith.constant 0 : index
      %41 = vector.load %arg1[%c0_28, %c0_29] : memref<16x32xf32, #tpu.memory_space<vmem>>, vector<16x32xf32>
      %c0_30 = arith.constant 0 : index
      %c0_31 = arith.constant 0 : index
      %42 = vector.load %arg6[%c0_30, %c0_31] : memref<32x64xf32, #tpu.memory_space<vmem>>, vector<32x64xf32>
      %cst_32 = arith.constant dense<0.000000e+00> : vector<16x64xf32>
      %43 = tpu.matmul %41, %42, %cst_32 {dimension_numbers = #tpu.dot_dimension_numbers<[1], [0], [0], [1], [0, 0, 1, 1], [], []>} : vector<16x32xf32>, vector<32x64xf32>, vector<16x64xf32> -> vector<16x64xf32>
      %c0_33 = arith.constant 0 : index
      %c0_34 = arith.constant 0 : index
      %44 = vector.load %arg7[%c0_33, %c0_34] : memref<1x64xf32, #tpu.memory_space<vmem>>, vector<1x64xf32>
      %45 = vector.broadcast %44 : vector<1x64xf32> to vector<16x64xf32>
      %46 = arith.addf %43, %45 : vector<16x64xf32>
      %cst_35 = arith.constant 0.000000e+00 : f32
      %47 = vector.broadcast %cst_35 : f32 to vector<16x64xf32>
      %48 = arith.maximumf %46, %47 : vector<16x64xf32>
      %49 = vector.extract_strided_slice %48 {offsets = [0, 0], sizes = [16, 32], strides = [1, 1]} : vector<16x64xf32> to vector<16x32xf32>
      %c0_36 = arith.constant 0 : index
      %c0_37 = arith.constant 0 : index
      %50 = vector.load %arg8[%c0_36, %c0_37] : memref<32x64xf32, #tpu.memory_space<vmem>>, vector<32x64xf32>
      %cst_38 = arith.constant dense<0.000000e+00> : vector<16x64xf32>
      %51 = tpu.matmul %49, %50, %cst_38 {dimension_numbers = #tpu.dot_dimension_numbers<[1], [0], [0], [1], [0, 0, 1, 1], [], []>} : vector<16x32xf32>, vector<32x64xf32>, vector<16x64xf32> -> vector<16x64xf32>
      %c0_39 = arith.constant 0 : index
      %c0_40 = arith.constant 0 : index
      %52 = vector.load %arg10[%c0_39, %c0_40] : memref<1x64xf32, #tpu.memory_space<vmem>>, vector<1x64xf32>
      %53 = vector.broadcast %52 : vector<1x64xf32> to vector<16x64xf32>
      %54 = arith.addf %51, %53 : vector<16x64xf32>
      %c0_41 = arith.constant 0 : index
      %c0_42 = arith.constant 0 : index
      %55 = vector.load %arg17[%c0_41, %c0_42] : memref<16x64xf32, #tpu.memory_space<vmem>>, vector<16x64xf32>
      tpu.vector_store %arg17[%c0_41, %c0_42], %54 {strides = array<i32>} : memref<16x64xf32, #tpu.memory_space<vmem>>, vector<16x64xf32>,
      %56 = vector.extract_strided_slice %48 {offsets = [0, 32], sizes = [16, 32], strides = [1, 1]} : vector<16x64xf32> to vector<16x32xf32>
      %c0_43 = arith.constant 0 : index
      %c0_44 = arith.constant 0 : index
      %57 = vector.load %arg9[%c0_43, %c0_44] : memref<32x64xf32, #tpu.memory_space<vmem>>, vector<32x64xf32>
      %cst_45 = arith.constant dense<0.000000e+00> : vector<16x64xf32>
      %58 = tpu.matmul %56, %57, %cst_45 {dimension_numbers = #tpu.dot_dimension_numbers<[1], [0], [0], [1], [0, 0, 1, 1], [], []>} : vector<16x32xf32>, vector<32x64xf32>, vector<16x64xf32> -> vector<16x64xf32>
      %c0_46 = arith.constant 0 : index
      %c0_47 = arith.constant 0 : index
      %59 = vector.load %arg18[%c0_46, %c0_47] : memref<16x64xf32, #tpu.memory_space<vmem>>, vector<16x64xf32>
      tpu.vector_store %arg18[%c0_46, %c0_47], %58 {strides = array<i32>} : memref<16x64xf32, #tpu.memory_space<vmem>>, vector<16x64xf32>,
    } else {
    }
    %3 = tpu.iota {dimensions = array<i32: 1>} : vector<16x16xi32>
    %c0 = arith.constant 0 : index
    %c0_1 = arith.constant 0 : index
    %4 = vector.load %arg2[%c0, %c0_1] : memref<16x1xi32, #tpu.memory_space<vmem>>, vector<16x1xi32>
    %5 = vector.broadcast %4 : vector<16x1xi32> to vector<16x16xi32>
    %6 = arith.cmpi eq, %5, %3 : vector<16x16xi32>
    %7 = arith.extui %6 : vector<16x16xi1> to vector<16x16xi32>
    %8 = arith.sitofp %7 : vector<16x16xi32> to vector<16x16xf32>
    %c0_2 = arith.constant 0 : index
    %c0_3 = arith.constant 0 : index
    %9 = vector.load %arg3[%c0_2, %c0_3] : memref<16x1xi32, #tpu.memory_space<vmem>>, vector<16x1xi32>
    %10 = vector.broadcast %9 : vector<16x1xi32> to vector<16x16xi32>
    %11 = arith.cmpi eq, %10, %3 : vector<16x16xi32>
    %12 = arith.extui %11 : vector<16x16xi1> to vector<16x16xi32>
    %13 = arith.sitofp %12 : vector<16x16xi32> to vector<16x16xf32>
    %c0_4 = arith.constant 0 : index
    %c0_5 = arith.constant 0 : index
    %14 = vector.load %arg17[%c0_4, %c0_5] : memref<16x64xf32, #tpu.memory_space<vmem>>, vector<16x64xf32>
    %cst = arith.constant dense<0.000000e+00> : vector<16x64xf32>
    %15 = tpu.matmul %8, %14, %cst {dimension_numbers = #tpu.dot_dimension_numbers<[1], [0], [0], [1], [0, 0, 1, 1], [], []>} : vector<16x16xf32>, vector<16x64xf32>, vector<16x64xf32> -> vector<16x64xf32>
    %c0_6 = arith.constant 0 : index
    %c0_7 = arith.constant 0 : index
    %16 = vector.load %arg18[%c0_6, %c0_7] : memref<16x64xf32, #tpu.memory_space<vmem>>, vector<16x64xf32>
    %cst_8 = arith.constant dense<0.000000e+00> : vector<16x64xf32>
    %17 = tpu.matmul %13, %16, %cst_8 {dimension_numbers = #tpu.dot_dimension_numbers<[1], [0], [0], [1], [0, 0, 1, 1], [], []>} : vector<16x16xf32>, vector<16x64xf32>, vector<16x64xf32> -> vector<16x64xf32>
    %18 = arith.addf %15, %17 : vector<16x64xf32>
    %c0_9 = arith.constant 0 : index
    %c0_10 = arith.constant 0 : index
    %19 = vector.load %arg5[%c0_9, %c0_10] : memref<16x32xf32, #tpu.memory_space<vmem>>, vector<16x32xf32>
    %c0_11 = arith.constant 0 : index
    %c0_12 = arith.constant 0 : index
    %20 = vector.load %arg11[%c0_11, %c0_12] : memref<32x64xf32, #tpu.memory_space<vmem>>, vector<32x64xf32>
    %cst_13 = arith.constant dense<0.000000e+00> : vector<16x64xf32>
    %21 = tpu.matmul %19, %20, %cst_13 {dimension_numbers = #tpu.dot_dimension_numbers<[1], [0], [0], [1], [0, 0, 1, 1], [], []>} : vector<16x32xf32>, vector<32x64xf32>, vector<16x64xf32> -> vector<16x64xf32>
    %c0_14 = arith.constant 0 : index
    %c0_15 = arith.constant 0 : index
    %22 = vector.load %arg12[%c0_14, %c0_15] : memref<1x64xf32, #tpu.memory_space<vmem>>, vector<1x64xf32>
    %23 = vector.broadcast %22 : vector<1x64xf32> to vector<16x64xf32>
    %24 = arith.addf %21, %23 : vector<16x64xf32>
    %25 = arith.mulf %18, %24 : vector<16x64xf32>
    %c0_16 = arith.constant 0 : index
    %c0_17 = arith.constant 0 : index
    %26 = vector.load %arg13[%c0_16, %c0_17] : memref<64x128xf32, #tpu.memory_space<vmem>>, vector<64x128xf32>
    %cst_18 = arith.constant dense<0.000000e+00> : vector<16x128xf32>
    %27 = tpu.matmul %25, %26, %cst_18 {dimension_numbers = #tpu.dot_dimension_numbers<[1], [0], [0], [1], [0, 0, 1, 1], [], []>} : vector<16x64xf32>, vector<64x128xf32>, vector<16x128xf32> -> vector<16x128xf32>
    %c0_19 = arith.constant 0 : index
    %c0_20 = arith.constant 0 : index
    %28 = vector.load %arg14[%c0_19, %c0_20] : memref<1x128xf32, #tpu.memory_space<vmem>>, vector<1x128xf32>
    %29 = vector.broadcast %28 : vector<1x128xf32> to vector<16x128xf32>
    %30 = arith.addf %27, %29 : vector<16x128xf32>
    %31 = tpu.iota {dimensions = array<i32: 1>} : vector<16x64xi32>
    %c0_21 = arith.constant 0 : index
    %c0_22 = arith.constant 0 : index
    %32 = vector.load %arg4[%c0_21, %c0_22] : memref<16x1xi32, #tpu.memory_space<vmem>>, vector<16x1xi32>
    %33 = vector.broadcast %32 : vector<16x1xi32> to vector<16x64xi32>
    %34 = arith.cmpi eq, %33, %31 : vector<16x64xi32>
    %35 = arith.extui %34 : vector<16x64xi1> to vector<16x64xi32>
    %36 = arith.sitofp %35 : vector<16x64xi32> to vector<16x64xf32>
    %c0_23 = arith.constant 0 : index
    %c0_24 = arith.constant 0 : index
    %37 = vector.load %arg15[%c0_23, %c0_24] : memref<64x128xf32, #tpu.memory_space<vmem>>, vector<64x128xf32>
    %cst_25 = arith.constant dense<0.000000e+00> : vector<16x128xf32>
    %38 = tpu.matmul %36, %37, %cst_25 {dimension_numbers = #tpu.dot_dimension_numbers<[1], [0], [0], [1], [0, 0, 1, 1], [], []>} : vector<16x64xf32>, vector<64x128xf32>, vector<16x128xf32> -> vector<16x128xf32>
    %39 = arith.addf %30, %38 : vector<16x128xf32>
    %c0_26 = arith.constant 0 : index
    %c0_27 = arith.constant 0 : index
    %40 = vector.load %arg16[%c0_26, %c0_27] : memref<16x128xf32, #tpu.memory_space<vmem>>, vector<16x128xf32>
    tpu.vector_store %arg16[%c0_26, %c0_27], %39 {strides = array<i32>} : memref<16x128xf32, #tpu.memory_space<vmem>>, vector<16x128xf32>,
    return
  }
  func.func @transform_0(%arg0: i32) -> (i32, i32) {
    %c0_i32 = arith.constant 0 : i32
    %c0_i32_0 = arith.constant 0 : i32
    %c0_i32_1 = arith.constant 0 : i32
    return %c0_i32, %c0_i32_0 : i32, i32
  }
  func.func @transform_1(%arg0: i32) -> (i32, i32) {
    %c0_i32 = arith.constant 0 : i32
    %c0_i32_0 = arith.constant 0 : i32
    return %arg0, %c0_i32 : i32, i32
  }
  func.func @transform_2(%arg0: i32) -> (i32, i32) {
    %c0_i32 = arith.constant 0 : i32
    %c0_i32_0 = arith.constant 0 : i32
    return %arg0, %c0_i32 : i32, i32
  }
  func.func @transform_3(%arg0: i32) -> (i32, i32) {
    %c0_i32 = arith.constant 0 : i32
    %c0_i32_0 = arith.constant 0 : i32
    return %arg0, %c0_i32 : i32, i32
  }
  func.func @transform_4(%arg0: i32) -> (i32, i32) {
    %c0_i32 = arith.constant 0 : i32
    %c0_i32_0 = arith.constant 0 : i32
    return %arg0, %c0_i32 : i32, i32
  }
  func.func @transform_5(%arg0: i32) -> (i32, i32) {
    %c0_i32 = arith.constant 0 : i32
    %c0_i32_0 = arith.constant 0 : i32
    %c0_i32_1 = arith.constant 0 : i32
    return %c0_i32, %c0_i32_0 : i32, i32
  }
  func.func @transform_6(%arg0: i32) -> (i32, i32) {
    %c0_i32 = arith.constant 0 : i32
    %c0_i32_0 = arith.constant 0 : i32
    %c0_i32_1 = arith.constant 0 : i32
    return %c0_i32, %c0_i32_0 : i32, i32
  }
  func.func @transform_7(%arg0: i32) -> (i32, i32) {
    %c0_i32 = arith.constant 0 : i32
    %c0_i32_0 = arith.constant 0 : i32
    %c0_i32_1 = arith.constant 0 : i32
    return %c0_i32, %c0_i32_0 : i32, i32
  }
  func.func @transform_8(%arg0: i32) -> (i32, i32) {
    %c0_i32 = arith.constant 0 : i32
    %c0_i32_0 = arith.constant 0 : i32
    %c0_i32_1 = arith.constant 0 : i32
    return %c0_i32, %c0_i32_0 : i32, i32
  }
  func.func @transform_9(%arg0: i32) -> (i32, i32) {
    %c0_i32 = arith.constant 0 : i32
    %c0_i32_0 = arith.constant 0 : i32
    %c0_i32_1 = arith.constant 0 : i32
    return %c0_i32, %c0_i32_0 : i32, i32
  }
  func.func @transform_10(%arg0: i32) -> (i32, i32) {
    %c0_i32 = arith.constant 0 : i32
    %c0_i32_0 = arith.constant 0 : i32
    %c0_i32_1 = arith.constant 0 : i32
    return %c0_i32, %c0_i32_0 : i32, i32
  }
  func.func @transform_11(%arg0: i32) -> (i32, i32) {
    %c0_i32 = arith.constant 0 : i32
    %c0_i32_0 = arith.constant 0 : i32
    %c0_i32_1 = arith.constant 0 : i32
    return %c0_i32, %c0_i32_0 : i32, i32
  }
  func.func @transform_12(%arg0: i32) -> (i32, i32) {
    %c0_i32 = arith.constant 0 : i32
    %c0_i32_0 = arith.constant 0 : i32
    %c0_i32_1 = arith.constant 0 : i32
    return %c0_i32, %c0_i32_0 : i32, i32
  }
  func.func @transform_13(%arg0: i32) -> (i32, i32) {
    %c0_i32 = arith.constant 0 : i32
    %c0_i32_0 = arith.constant 0 : i32
    %c0_i32_1 = arith.constant 0 : i32
    return %c0_i32, %c0_i32_0 : i32, i32
  }
  func.func @transform_14(%arg0: i32) -> (i32, i32) {
    %c0_i32 = arith.constant 0 : i32
    %c0_i32_0 = arith.constant 0 : i32
    %c0_i32_1 = arith.constant 0 : i32
    return %c0_i32, %c0_i32_0 : i32, i32
  }
  func.func @transform_15(%arg0: i32) -> (i32, i32) {
    %c0_i32 = arith.constant 0 : i32
    %c0_i32_0 = arith.constant 0 : i32
    return %arg0, %c0_i32 : i32, i32
  }
}

module attributes {stable_mosaic.version = 11 : i64} {
  func.func @_vctree_fused_kernel(%arg0: i32, %arg1: memref<16x32xf32, #tpu.memory_space<vmem>>, %arg2: memref<16x1xi32, #tpu.memory_space<vmem>>, %arg3: memref<16x1xi32, #tpu.memory_space<vmem>>, %arg4: memref<16x1xi32, #tpu.memory_space<vmem>>, %arg5: memref<16x32xf32, #tpu.memory_space<vmem>>, %arg6: memref<32x64xf32, #tpu.memory_space<vmem>>, %arg7: memref<1x64xf32, #tpu.memory_space<vmem>>, %arg8: memref<32x64xf32, #tpu.memory_space<vmem>>, %arg9: memref<32x64xf32, #tpu.memory_space<vmem>>, %arg10: memref<1x64xf32, #tpu.memory_space<vmem>>, %arg11: memref<32x64xf32, #tpu.memory_space<vmem>>, %arg12: memref<1x64xf32, #tpu.memory_space<vmem>>, %arg13: memref<64x128xf32, #tpu.memory_space<vmem>>, %arg14: memref<1x128xf32, #tpu.memory_space<vmem>>, %arg15: memref<64x128xf32, #tpu.memory_space<vmem>>, %arg16: memref<16x128xf32, #tpu.memory_space<vmem>>, %arg17: memref<16x64xf32, #tpu.memory_space<vmem>>, %arg18: memref<16x64xf32, #tpu.memory_space<vmem>>) attributes {dimension_semantics = [#tpu.dimension_semantics<arbitrary>], iteration_bounds = array<i64: 1>, scalar_prefetch = 0 : i64, scratch_operands = 2 : i64, tpu.core_type = #tpu.core_type<tc>, window_params = [{pipeline_mode = #tpu.pipeline_mode<synchronous>, transform_indices = @transform_0, window_bounds = array<i64: 16, 32>}, {transform_indices = @transform_1, window_bounds = array<i64: 16, 1>}, {transform_indices = @transform_2, window_bounds = array<i64: 16, 1>}, {transform_indices = @transform_3, window_bounds = array<i64: 16, 1>}, {transform_indices = @transform_4, window_bounds = array<i64: 16, 32>}, {pipeline_mode = #tpu.pipeline_mode<synchronous>, transform_indices = @transform_5, window_bounds = array<i64: 32, 64>}, {pipeline_mode = #tpu.pipeline_mode<synchronous>, transform_indices = @transform_6, window_bounds = array<i64: 1, 64>}, {pipeline_mode = #tpu.pipeline_mode<synchronous>, transform_indices = @transform_7, window_bounds = array<i64: 32, 64>}, {pipeline_mode = #tpu.pipeline_mode<synchronous>, transform_indices = @transform_8, window_bounds = array<i64: 32, 64>}, {pipeline_mode = #tpu.pipeline_mode<synchronous>, transform_indices = @transform_9, window_bounds = array<i64: 1, 64>}, {pipeline_mode = #tpu.pipeline_mode<synchronous>, transform_indices = @transform_10, window_bounds = array<i64: 32, 64>}, {pipeline_mode = #tpu.pipeline_mode<synchronous>, transform_indices = @transform_11, window_bounds = array<i64: 1, 64>}, {pipeline_mode = #tpu.pipeline_mode<synchronous>, transform_indices = @transform_12, window_bounds = array<i64: 64, 128>}, {pipeline_mode = #tpu.pipeline_mode<synchronous>, transform_indices = @transform_13, window_bounds = array<i64: 1, 128>}, {pipeline_mode = #tpu.pipeline_mode<synchronous>, transform_indices = @transform_14, window_bounds = array<i64: 64, 128>}, {transform_indices = @transform_15, window_bounds = array<i64: 16, 128>}]} {
    %c0_i32 = arith.constant 0 : i32
    %0 = arith.cmpi eq, %arg0, %c0_i32 : i32
    %1 = arith.extui %0 : i1 to i32
    %c0_i32_0 = arith.constant 0 : i32
    %2 = arith.cmpi ne, %1, %c0_i32_0 : i32
    scf.if %2 {
      %c0_28 = arith.constant 0 : index
      %c0_29 = arith.constant 0 : index
      %41 = vector.load %arg1[%c0_28, %c0_29] : memref<16x32xf32, #tpu.memory_space<vmem>>, vector<16x32xf32>
      %c0_30 = arith.constant 0 : index
      %c0_31 = arith.constant 0 : index
      %42 = vector.load %arg6[%c0_30, %c0_31] : memref<32x64xf32, #tpu.memory_space<vmem>>, vector<32x64xf32>
      %cst_32 = arith.constant dense<0.000000e+00> : vector<16x64xf32>
      %43 = tpu.matmul %41, %42, %cst_32 {dimension_numbers = #tpu.dot_dimension_numbers<[1], [0], [0], [1], [0, 0, 1, 1], [], []>} : vector<16x32xf32>, vector<32x64xf32>, vector<16x64xf32> -> vector<16x64xf32>
      %c0_33 = arith.constant 0 : index
      %c0_34 = arith.constant 0 : index
      %44 = vector.load %arg7[%c0_33, %c0_34] : memref<1x64xf32, #tpu.memory_space<vmem>>, vector<1x64xf32>
      %45 = vector.broadcast %44 : vector<1x64xf32> to vector<16x64xf32>
      %46 = arith.addf %43, %45 : vector<16x64xf32>
      %cst_35 = arith.constant 0.000000e+00 : f32
      %47 = vector.broadcast %cst_35 : f32 to vector<16x64xf32>
      %48 = arith.maximumf %46, %47 : vector<16x64xf32>
      %49 = vector.extract_strided_slice %48 {offsets = [0, 0], sizes = [16, 32], strides = [1, 1]} : vector<16x64xf32> to vector<16x32xf32>
      %c0_36 = arith.constant 0 : index
      %c0_37 = arith.constant 0 : index
      %50 = vector.load %arg8[%c0_36, %c0_37] : memref<32x64xf32, #tpu.memory_space<vmem>>, vector<32x64xf32>
      %cst_38 = arith.constant dense<0.000000e+00> : vector<16x64xf32>
      %51 = tpu.matmul %49, %50, %cst_38 {dimension_numbers = #tpu.dot_dimension_numbers<[1], [0], [0], [1], [0, 0, 1, 1], [], []>} : vector<16x32xf32>, vector<32x64xf32>, vector<16x64xf32> -> vector<16x64xf32>
      %c0_39 = arith.constant 0 : index
      %c0_40 = arith.constant 0 : index
      %52 = vector.load %arg10[%c0_39, %c0_40] : memref<1x64xf32, #tpu.memory_space<vmem>>, vector<1x64xf32>
      %53 = vector.broadcast %52 : vector<1x64xf32> to vector<16x64xf32>
      %54 = arith.addf %51, %53 : vector<16x64xf32>
      %c0_41 = arith.constant 0 : index
      %c0_42 = arith.constant 0 : index
      %55 = vector.load %arg17[%c0_41, %c0_42] : memref<16x64xf32, #tpu.memory_space<vmem>>, vector<16x64xf32>
      tpu.vector_store %arg17[%c0_41, %c0_42], %54 {strides = array<i32>} : memref<16x64xf32, #tpu.memory_space<vmem>>, vector<16x64xf32>,
      %56 = vector.extract_strided_slice %48 {offsets = [0, 32], sizes = [16, 32], strides = [1, 1]} : vector<16x64xf32> to vector<16x32xf32>
      %c0_43 = arith.constant 0 : index
      %c0_44 = arith.constant 0 : index
      %57 = vector.load %arg9[%c0_43, %c0_44] : memref<32x64xf32, #tpu.memory_space<vmem>>, vector<32x64xf32>
      %cst_45 = arith.constant dense<0.000000e+00> : vector<16x64xf32>
      %58 = tpu.matmul %56, %57, %cst_45 {dimension_numbers = #tpu.dot_dimension_numbers<[1], [0], [0], [1], [0, 0, 1, 1], [], []>} : vector<16x32xf32>, vector<32x64xf32>, vector<16x64xf32> -> vector<16x64xf32>
      %c0_46 = arith.constant 0 : index
      %c0_47 = arith.constant 0 : index
      %59 = vector.load %arg18[%c0_46, %c0_47] : memref<16x64xf32, #tpu.memory_space<vmem>>, vector<16x64xf32>
      tpu.vector_store %arg18[%c0_46, %c0_47], %58 {strides = array<i32>} : memref<16x64xf32, #tpu.memory_space<vmem>>, vector<16x64xf32>,
    } else {
    }
    %3 = tpu.iota {dimensions = array<i32: 1>} : vector<16x16xi32>
    %c0 = arith.constant 0 : index
    %c0_1 = arith.constant 0 : index
    %4 = vector.load %arg2[%c0, %c0_1] : memref<16x1xi32, #tpu.memory_space<vmem>>, vector<16x1xi32>
    %5 = vector.broadcast %4 : vector<16x1xi32> to vector<16x16xi32>
    %6 = arith.cmpi eq, %5, %3 : vector<16x16xi32>
    %7 = arith.extui %6 : vector<16x16xi1> to vector<16x16xi32>
    %8 = arith.sitofp %7 : vector<16x16xi32> to vector<16x16xf32>
    %c0_2 = arith.constant 0 : index
    %c0_3 = arith.constant 0 : index
    %9 = vector.load %arg3[%c0_2, %c0_3] : memref<16x1xi32, #tpu.memory_space<vmem>>, vector<16x1xi32>
    %10 = vector.broadcast %9 : vector<16x1xi32> to vector<16x16xi32>
    %11 = arith.cmpi eq, %10, %3 : vector<16x16xi32>
    %12 = arith.extui %11 : vector<16x16xi1> to vector<16x16xi32>
    %13 = arith.sitofp %12 : vector<16x16xi32> to vector<16x16xf32>
    %c0_4 = arith.constant 0 : index
    %c0_5 = arith.constant 0 : index
    %14 = vector.load %arg17[%c0_4, %c0_5] : memref<16x64xf32, #tpu.memory_space<vmem>>, vector<16x64xf32>
    %cst = arith.constant dense<0.000000e+00> : vector<16x64xf32>
    %15 = tpu.matmul %8, %14, %cst {dimension_numbers = #tpu.dot_dimension_numbers<[1], [0], [0], [1], [0, 0, 1, 1], [], []>} : vector<16x16xf32>, vector<16x64xf32>, vector<16x64xf32> -> vector<16x64xf32>
    %c0_6 = arith.constant 0 : index
    %c0_7 = arith.constant 0 : index
    %16 = vector.load %arg18[%c0_6, %c0_7] : memref<16x64xf32, #tpu.memory_space<vmem>>, vector<16x64xf32>
    %cst_8 = arith.constant dense<0.000000e+00> : vector<16x64xf32>
    %17 = tpu.matmul %13, %16, %cst_8 {dimension_numbers = #tpu.dot_dimension_numbers<[1], [0], [0], [1], [0, 0, 1, 1], [], []>} : vector<16x16xf32>, vector<16x64xf32>, vector<16x64xf32> -> vector<16x64xf32>
    %18 = arith.addf %15, %17 : vector<16x64xf32>
    %c0_9 = arith.constant 0 : index
    %c0_10 = arith.constant 0 : index
    %19 = vector.load %arg5[%c0_9, %c0_10] : memref<16x32xf32, #tpu.memory_space<vmem>>, vector<16x32xf32>
    %c0_11 = arith.constant 0 : index
    %c0_12 = arith.constant 0 : index
    %20 = vector.load %arg11[%c0_11, %c0_12] : memref<32x64xf32, #tpu.memory_space<vmem>>, vector<32x64xf32>
    %cst_13 = arith.constant dense<0.000000e+00> : vector<16x64xf32>
    %21 = tpu.matmul %19, %20, %cst_13 {dimension_numbers = #tpu.dot_dimension_numbers<[1], [0], [0], [1], [0, 0, 1, 1], [], []>} : vector<16x32xf32>, vector<32x64xf32>, vector<16x64xf32> -> vector<16x64xf32>
    %c0_14 = arith.constant 0 : index
    %c0_15 = arith.constant 0 : index
    %22 = vector.load %arg12[%c0_14, %c0_15] : memref<1x64xf32, #tpu.memory_space<vmem>>, vector<1x64xf32>
    %23 = vector.broadcast %22 : vector<1x64xf32> to vector<16x64xf32>
    %24 = arith.addf %21, %23 : vector<16x64xf32>
    %25 = arith.mulf %18, %24 : vector<16x64xf32>
    %c0_16 = arith.constant 0 : index
    %c0_17 = arith.constant 0 : index
    %26 = vector.load %arg13[%c0_16, %c0_17] : memref<64x128xf32, #tpu.memory_space<vmem>>, vector<64x128xf32>
    %cst_18 = arith.constant dense<0.000000e+00> : vector<16x128xf32>
    %27 = tpu.matmul %25, %26, %cst_18 {dimension_numbers = #tpu.dot_dimension_numbers<[1], [0], [0], [1], [0, 0, 1, 1], [], []>} : vector<16x64xf32>, vector<64x128xf32>, vector<16x128xf32> -> vector<16x128xf32>
    %c0_19 = arith.constant 0 : index
    %c0_20 = arith.constant 0 : index
    %28 = vector.load %arg14[%c0_19, %c0_20] : memref<1x128xf32, #tpu.memory_space<vmem>>, vector<1x128xf32>
    %29 = vector.broadcast %28 : vector<1x128xf32> to vector<16x128xf32>
    %30 = arith.addf %27, %29 : vector<16x128xf32>
    %31 = tpu.iota {dimensions = array<i32: 1>} : vector<16x64xi32>
    %c0_21 = arith.constant 0 : index
    %c0_22 = arith.constant 0 : index
    %32 = vector.load %arg4[%c0_21, %c0_22] : memref<16x1xi32, #tpu.memory_space<vmem>>, vector<16x1xi32>
    %33 = vector.broadcast %32 : vector<16x1xi32> to vector<16x64xi32>
    %34 = arith.cmpi eq, %33, %31 : vector<16x64xi32>
    %35 = arith.extui %34 : vector<16x64xi1> to vector<16x64xi32>
    %36 = arith.sitofp %35 : vector<16x64xi32> to vector<16x64xf32>
    %c0_23 = arith.constant 0 : index
    %c0_24 = arith.constant 0 : index
    %37 = vector.load %arg15[%c0_23, %c0_24] : memref<64x128xf32, #tpu.memory_space<vmem>>, vector<64x128xf32>
    %cst_25 = arith.constant dense<0.000000e+00> : vector<16x128xf32>
    %38 = tpu.matmul %36, %37, %cst_25 {dimension_numbers = #tpu.dot_dimension_numbers<[1], [0], [0], [1], [0, 0, 1, 1], [], []>} : vector<16x64xf32>, vector<64x128xf32>, vector<16x128xf32> -> vector<16x128xf32>
    %39 = arith.addf %30, %38 : vector<16x128xf32>
    %c0_26 = arith.constant 0 : index
    %c0_27 = arith.constant 0 : index
    %40 = vector.load %arg16[%c0_26, %c0_27] : memref<16x128xf32, #tpu.memory_space<vmem>>, vector<16x128xf32>
    tpu.vector_store %arg16[%c0_26, %c0_27], %39 {strides = array<i32>} : memref<16x128xf32, #tpu.memory_space<vmem>>, vector<16x128xf32>,
    return
  }
  func.func @transform_0(%arg0: i32) -> (i32, i32) {
    %c0_i32 = arith.constant 0 : i32
    %c0_i32_0 = arith.constant 0 : i32
    %c0_i32_1 = arith.constant 0 : i32
    return %c0_i32, %c0_i32_0 : i32, i32
  }
  func.func @transform_1(%arg0: i32) -> (i32, i32) {
    %c0_i32 = arith.constant 0 : i32
    %c0_i32_0 = arith.constant 0 : i32
    return %arg0, %c0_i32 : i32, i32
  }
  func.func @transform_2(%arg0: i32) -> (i32, i32) {
    %c0_i32 = arith.constant 0 : i32
    %c0_i32_0 = arith.constant 0 : i32
    return %arg0, %c0_i32 : i32, i32
  }
  func.func @transform_3(%arg0: i32) -> (i32, i32) {
    %c0_i32 = arith.constant 0 : i32
    %c0_i32_0 = arith.constant 0 : i32
    return %arg0, %c0_i32 : i32, i32
  }
  func.func @transform_4(%arg0: i32) -> (i32, i32) {
    %c0_i32 = arith.constant 0 : i32
    %c0_i32_0 = arith.constant 0 : i32
    return %arg0, %c0_i32 : i32, i32
  }
  func.func @transform_5(%arg0: i32) -> (i32, i32) {
    %c0_i32 = arith.constant 0 : i32
    %c0_i32_0 = arith.constant 0 : i32
    %c0_i32_1 = arith.constant 0 : i32
    return %c0_i32, %c0_i32_0 : i32, i32
  }
  func.func @transform_6(%arg0: i32) -> (i32, i32) {
    %c0_i32 = arith.constant 0 : i32
    %c0_i32_0 = arith.constant 0 : i32
    %c0_i32_1 = arith.constant 0 : i32
    return %c0_i32, %c0_i32_0 : i32, i32
  }
  func.func @transform_7(%arg0: i32) -> (i32, i32) {
    %c0_i32 = arith.constant 0 : i32
    %c0_i32_0 = arith.constant 0 : i32
    %c0_i32_1 = arith.constant 0 : i32
    return %c0_i32, %c0_i32_0 : i32, i32
  }
  func.func @transform_8(%arg0: i32) -> (i32, i32) {
    %c0_i32 = arith.constant 0 : i32
    %c0_i32_0 = arith.constant 0 : i32
    %c0_i32_1 = arith.constant 0 : i32
    return %c0_i32, %c0_i32_0 : i32, i32
  }
  func.func @transform_9(%arg0: i32) -> (i32, i32) {
    %c0_i32 = arith.constant 0 : i32
    %c0_i32_0 = arith.constant 0 : i32
    %c0_i32_1 = arith.constant 0 : i32
    return %c0_i32, %c0_i32_0 : i32, i32
  }
  func.func @transform_10(%arg0: i32) -> (i32, i32) {
    %c0_i32 = arith.constant 0 : i32
    %c0_i32_0 = arith.constant 0 : i32
    %c0_i32_1 = arith.constant 0 : i32
    return %c0_i32, %c0_i32_0 : i32, i32
  }
  func.func @transform_11(%arg0: i32) -> (i32, i32) {
    %c0_i32 = arith.constant 0 : i32
    %c0_i32_0 = arith.constant 0 : i32
    %c0_i32_1 = arith.constant 0 : i32
    return %c0_i32, %c0_i32_0 : i32, i32
  }
  func.func @transform_12(%arg0: i32) -> (i32, i32) {
    %c0_i32 = arith.constant 0 : i32
    %c0_i32_0 = arith.constant 0 : i32
    %c0_i32_1 = arith.constant 0 : i32
    return %c0_i32, %c0_i32_0 : i32, i32
  }
  func.func @transform_13(%arg0: i32) -> (i32, i32) {
    %c0_i32 = arith.constant 0 : i32
    %c0_i32_0 = arith.constant 0 : i32
    %c0_i32_1 = arith.constant 0 : i32
    return %c0_i32, %c0_i32_0 : i32, i32
  }
  func.func @transform_14(%arg0: i32) -> (i32, i32) {
    %c0_i32 = arith.constant 0 : i32
    %c0_i32_0 = arith.constant 0 : i32
    %c0_i32_1 = arith.constant 0 : i32
    return %c0_i32, %c0_i32_0 : i32, i32
  }
  func.func @transform_15(%arg0: i32) -> (i32, i32) {
    %c0_i32 = arith.constant 0 : i32
    %c0_i32_0 = arith.constant 0 : i32
    return %arg0, %c0_i32 : i32, i32
  }
}

</mosaic_0001>

<bundles_post_ra>
// kernel: tpu_custom_call.1
= control target key start
LH: loop header
LB: loop body
LE: loop exit
PB: predicated region body
PF: predicated region fallthrough
CT: control target
= control target key end

     0   :  { %20 = vsyncpa [#allocation5], 0  ;;  %s1534_s0 = inlined_call_operand.hbm [shape: f32[16,32], index: 0, kind: input, shape index: {}]   ;;  %s1535_s1 = inlined_call_operand.vmem [shape: s32[16,1], index: 1, kind: input, shape index: {}]   ;;  %s1536_s2 = inlined_call_operand.vmem [shape: s32[16,1], index: 2, kind: input, shape index: {}]   ;;  %s1537_s3 = inlined_call_operand.vmem [shape: s32[16,1], index: 3, kind: input, shape index: {}]   ;;  %s1538_s4 = inlined_call_operand.hbm [shape: f32[16,32], index: 4, kind: input, shape index: {}]   ;;  %s1539_s5 = inlined_call_operand.hbm [shape: f32[32,64], index: 5, kind: input, shape index: {}]   ;;  %s1540_s6 = inlined_call_operand.vmem [shape: f32[1,64], index: 6, kind: input, shape index: {}]   ;;  %s1541_s7 = inlined_call_operand.hbm [shape: f32[32,64], index: 7, kind: input, shape index: {}]   ;;  %s1542_s8 = inlined_call_operand.hbm [shape: f32[32,64], index: 8, kind: input, shape index: {}]   ;;  %s1543_s9 = inlined_call_operand.vmem [shape: f32[1,64], index: 9, kind: input, shape index: {}]   ;;  %s1544_s10 = inlined_call_operand.hbm [shape: f32[32,64], index: 10, kind: input, shape index: {}]   ;;  %s1545_s11 = inlined_call_operand.vmem [shape: f32[1,64], index: 11, kind: input, shape index: {}]   ;;  %s1546_s12 = inlined_call_operand.vmem [shape: f32[64,128], index: 12, kind: input, shape index: {}]   ;;  %s1547_s13 = inlined_call_operand.vmem [shape: f32[1,128], index: 13, kind: input, shape index: {}]   ;;  %s1548_s14 = inlined_call_operand.hbm [shape: f32[64,128], index: 14, kind: input, shape index: {}]   ;;  %s1549_s15 = inlined_call_operand.hbm [shape: f32[16,128], index: 15, kind: output, shape index: {}]  }
   0x1   :  { %21 = vsyncpa [#allocation8], 0 }
   0x2   :  { %22 = vsyncpa [#allocation11], 0 }
   0x3   :  { %23 = vsyncpa [#allocation14], 0 }
   0x4   :  { %24 = vsyncpa [#allocation6], 0  ;;  %s1308_s18 = smov [#allocation7]   ;;  %s1309_s20 = smov [#allocation10]  }
   0x5   :  { %s48_s19 = sshll.u32 %s1308_s18, 4  ;;  %s74_s21 = sshll.u32 %s1309_s20, 4  ;;  %s49_s19 = int_to_ptr.vmem [resolvable:$true] %s48_s19  ;;  %s75_s21 = int_to_ptr.vmem [resolvable:$true] %s74_s21 }
   0x6   :  { %s1146_s22 = scalar_lea.vmem %s49_s19, 256  ;;  %p1151_p1 = scmp.lt.s32.totalorder %s49_s19, %s49_s19 }
   0x7   :  { %p1147_p0 = scmp.ne.s32.totalorder %s49_s19, %s1146_s22  ;;  %p1152_p2 = scmp.lt.s32.totalorder %s1146_s22, %s1146_s22 }
   0x9   :  { %p1153_p3 = por %p1152_p2, %p1151_p1 }
   0xb   :  { %p1154_p4 = pnand %p1153_p3, %p1147_p0 }
   0xd   :  { %1157 = shalt.err (!%p1154_p4)
}
   0xe   :  { %s1310_s23 = smov 128   ;;  %s1311_s24 = smov 8  }
   0xf   :  { %54 = dma.hbm_to_vmem [thread:$0]  %s1538_s4, 256, %s49_s19, [#allocation8], %s1310_s23, %s1310_s23, %s1311_s24  }
  0x10   :  { %s1166_s27 = scalar_lea.vmem %s75_s21, 512  ;;  %p1171_p6 = scmp.lt.s32.totalorder %s75_s21, %s75_s21 }
  0x11   :  { %p1167_p5 = scmp.ne.s32.totalorder %s75_s21, %s1166_s27  ;;  %p1172_p7 = scmp.lt.s32.totalorder %s1166_s27, %s1166_s27 }
  0x13   :  { %p1173_p8 = por %p1172_p7, %p1171_p6 }
  0x15   :  { %p1174_p9 = pnand %p1173_p8, %p1167_p5 }
  0x17   :  { %1177 = shalt.err (!%p1174_p9)
}
  0x18   :  { %80 = dma.hbm_to_vmem [thread:$0]  %s1541_s7, 512, %s75_s21, [#allocation11], %s1310_s23, %s1310_s23, %s1311_s24  }
  0x19   :  { %s1312_s30 = smov [#allocation13]   ;;  %s1313_s17 = smov [#allocation4]  }
  0x1a   :  { %s100_s16 = sshll.u32 %s1312_s30, 4  ;;  %s30_s18 = sshll.u32 %s1313_s17, 4  ;;  %s101_s16 = int_to_ptr.vmem [resolvable:$true] %s100_s16  ;;  %s31_s18 = int_to_ptr.vmem [resolvable:$true] %s30_s18 }
  0x1b   :  { %s1186_s4 = scalar_lea.vmem %s101_s16, 512  ;;  %p1191_p11 = scmp.lt.s32.totalorder %s101_s16, %s101_s16 }
  0x1c   :  { %p1187_p10 = scmp.ne.s32.totalorder %s101_s16, %s1186_s4  ;;  %p1192_p12 = scmp.lt.s32.totalorder %s1186_s4, %s1186_s4 }
  0x1e   :  { %p1193_p13 = por %p1192_p12, %p1191_p11 }
  0x20   :  { %p1194_p0 = pnand %p1193_p13, %p1187_p10 }
  0x22   :  { %1197 = shalt.err (!%p1194_p0)
}
  0x23   :  { %106 = dma.hbm_to_vmem [thread:$0]  %s1544_s10, 512, %s101_s16, [#allocation14], %s1310_s23, %s1310_s23, %s1311_s24  }
  0x24   :  { %s1206_s7 = scalar_lea.vmem %s31_s18, 256  ;;  %p1211_p2 = scmp.lt.s32.totalorder %s31_s18, %s31_s18 }
  0x25   :  { %p1207_p1 = scmp.ne.s32.totalorder %s31_s18, %s1206_s7  ;;  %p1212_p3 = scmp.lt.s32.totalorder %s1206_s7, %s1206_s7 }
  0x27   :  { %p1213_p4 = por %p1212_p3, %p1211_p2 }
  0x29   :  { %p1214_p5 = pnand %p1213_p4, %p1207_p1 }
  0x2b   :  { %1217 = shalt.err (!%p1214_p5)
}
  0x2c   :  { %36 = dma.hbm_to_vmem [thread:$0]  %s1534_s0, 256, %s31_s18, [#allocation5], %s1310_s23, %s1310_s23, %s1311_s24  }
  0x2d   :  { %s1314_s25 = smov [#allocation9]   ;;  %s1315_s27 = smov [#allocation12]  }
  0x2e   :  { %s60_s26 = sshll.u32 %s1314_s25, 4  ;;  %s86_s28 = sshll.u32 %s1315_s27, 4  ;;  %s61_s26 = int_to_ptr.vmem [resolvable:$true] %s60_s26  ;;  %s87_s28 = int_to_ptr.vmem [resolvable:$true] %s86_s28 }
  0x2f   :  { %s1226_s10 = scalar_lea.vmem %s61_s26, 512  ;;  %p1231_p7 = scmp.lt.s32.totalorder %s61_s26, %s61_s26 }
  0x30   :  { %p1227_p6 = scmp.ne.s32.totalorder %s61_s26, %s1226_s10  ;;  %p1232_p8 = scmp.lt.s32.totalorder %s1226_s10, %s1226_s10 }
  0x32   :  { %p1233_p9 = por %p1232_p8, %p1231_p7 }
  0x34   :  { %p1234_p10 = pnand %p1233_p9, %p1227_p6 }
  0x36   :  { %1237 = shalt.err (!%p1234_p10)
}
  0x37   :  { %66 = dma.hbm_to_vmem [thread:$0]  %s1539_s5, 512, %s61_s26, [#allocation8], %s1310_s23, %s1310_s23, %s1311_s24  }
  0x38   :  { %s1246_s0 = scalar_lea.vmem %s87_s28, 512  ;;  %p1251_p12 = scmp.lt.s32.totalorder %s87_s28, %s87_s28 }
  0x39   :  { %p1247_p11 = scmp.ne.s32.totalorder %s87_s28, %s1246_s0  ;;  %p1252_p13 = scmp.lt.s32.totalorder %s1246_s0, %s1246_s0 }
  0x3b   :  { %p1253_p0 = por %p1252_p13, %p1251_p12 }
  0x3d   :  { %p1254_p1 = pnand %p1253_p0, %p1247_p11 }
  0x3f   :  { %1257 = shalt.err (!%p1254_p1)
}
  0x40   :  { %92 = dma.hbm_to_vmem [thread:$0]  %s1542_s8, 512, %s87_s28, [#allocation11], %s1310_s23, %s1310_s23, %s1311_s24  }
  0x41   :  { %s1316_s18 = smov [#allocation15]  }
  0x42   :  { %s118_s4 = sshll.u32 %s1316_s18, 4  ;;  %s119_s4 = int_to_ptr.vmem [resolvable:$true] %s118_s4 }
  0x43   :  { %s1266_s19 = scalar_lea.vmem %s119_s4, 1024  ;;  %p1271_p3 = scmp.lt.s32.totalorder %s119_s4, %s119_s4 }
  0x44   :  { %p1267_p2 = scmp.ne.s32.totalorder %s119_s4, %s1266_s19  ;;  %p1272_p4 = scmp.lt.s32.totalorder %s1266_s19, %s1266_s19 }
  0x46   :  { %p1273_p5 = por %p1272_p4, %p1271_p3 }
  0x48   :  { %p1274_p6 = pnand %p1273_p5, %p1267_p2 }
  0x4a   :  { %1277 = shalt.err (!%p1274_p6)
}
  0x4b   :  { %124 = dma.hbm_to_vmem [thread:$0]  %s1548_s14, 1024, %s119_s4, [#allocation14], %s1310_s23, %s1310_s23, %s1311_s24  }
  0x4c   :  { %1298 = dma.done.wait [#allocation5], 256  }
  0x4d   :  { %1299 = vsyncadd [#allocation5], 4294967040 }
  0x4e   :  { %1300 = dma.done.wait [#allocation8], 768  }
  0x4f   :  { %1301 = vsyncadd [#allocation8], 4294966528 }
  0x50   :  { %1302 = dma.done.wait [#allocation11], 1024  }
  0x51   :  { %1303 = vsyncadd [#allocation11], 4294966272 }
  0x52   :  { %1304 = dma.done.wait [#allocation14], 1536  }
  0x53   :  { %1305 = vsyncadd [#allocation14], 4294965760  ;;  %vm163_vm0 = vcmask 261120   ;;  %v155_v0 = vld [vmem:[#allocation9 + $0x18] sm:$0xff]  ;;  %v154_v1 = vld [vmem:[#allocation9 + $0x10] sm:$0xff]  ;;  %v1317_v16 = vmov 0   ;;  %v431_v37 = vlaneseq }
  0x54   :  { %1027 = vmatprep.subr.mxu0 %v155_v0  ;;  %v150_v2 = vld [vmem:[#allocation4] sm:$0xff]  ;;  %v153_v3 = vld [vmem:[#allocation9 + $0x8] sm:$0xff]  ;;  %v250_v6 = vld [vmem:[#allocation10 + $0x18] sm:$0xff]  ;;  %1136 = vset.pattern.permute.xlu1 %v1317_v16  ;;  %v1319_v46 = vmov 0.0   ;;  %vm465_vm3 = vcmask 130048   ;;  %vm339_vm4 = vcmask 523264  }
  0x55   :  { %1028 = vmatpush3.msra.mxu0 %v155_v0  ;;  %1035 = vmatprep.mubr.msk.f32.mxu0 %vm163_vm0, %v150_v2  ;;  %v152_v4 = vld [vmem:[#allocation9] sm:$0xff]  ;;  %v151_v5 = vld [vmem:[#allocation4 + $0x8] sm:$0xff]  ;;  %v249_v7 = vld [vmem:[#allocation10 + $0x10] sm:$0xff]  ;;  %v1471_v40 = vand.u32 127, %v431_v37 }
  0x56   :  { %1029 = vmatprep.subr.mxu0 %v154_v1  ;;  %1038 = vmatprep.subr.mxu1 %v250_v6  ;;  %v248_v8 = vld [vmem:[#allocation10 + $0x8] sm:$0xff]  ;;  %v247_v9 = vld [vmem:[#allocation10] sm:$0xff]  ;;  %v345_v10 = vld [vmem:[#allocation12 + $0x18] sm:$0xff] }
  0x57   :  { %1030 = vmatpush3.msra.mxu0 %v154_v1  ;;  %1039 = vmatpush3.msra.mxu1 %v250_v6  ;;  %v344_v11 = vld [vmem:[#allocation12 + $0x10] sm:$0xff]  ;;  %v343_v12 = vld [vmem:[#allocation12 + $0x8] sm:$0xff]  ;;  %v342_v13 = vld [vmem:[#allocation12] sm:$0xff] }
  0x58   :  { %1031 = vmatprep.subr.mxu0 %v153_v3  ;;  %1040 = vmatprep.subr.mxu1 %v249_v7  ;;  %v447_v14 = vld [vmem:[%s1536_s2] sm:$0xff]  ;;  %v448_v18 = vld [vmem:[%s1536_s2 + $0x8] sm:$0xff]  ;;  %v633_v28 = vld [vmem:[#allocation13 + $0x18] sm:$0xff] }
  0x59   :  { %1032 = vmatpush3.msra.mxu0 %v153_v3  ;;  %1041 = vmatpush3.msra.mxu1 %v249_v7  ;;  %v949_v15 = vld [vmem:[%s1540_s6] ss:$0 sm:$0xff]  ;;  %v434_v23 = vld [vmem:[%s1535_s1 + $0x8] sm:$0xff]  ;;  %s1318_s6 = smov 96   ;;  %v628_v30 = vld [vmem:[#allocation7] sm:$0xff] }
  0x5a   :  { %1033 = vmatprep.subr.mxu0 %v152_v4  ;;  %1042 = vmatprep.subr.mxu1 %v248_v8  ;;  %v822_v25 = vld [vmem:[%s1537_s3] sm:$0xff]  ;;  %v823_v27 = vld [vmem:[%s1537_s3 + $0x8] sm:$0xff]  ;;  %v632_v32 = vld [vmem:[#allocation13 + $0x10] sm:$0xff] }
  0x5b   :  { %1034 = vmatpush3.msra.mxu0 %v152_v4  ;;  %1043 = vmatpush3.msra.mxu1 %v248_v8  ;;  %v433_v26 = vld [vmem:[%s1535_s1] sm:$0xff]  ;;  %v631_v33 = vld [vmem:[#allocation13 + $0x8] sm:$0xff]  ;;  %v843_v35 = vld [vmem:[#allocation15 + $0x38] sm:$0xff] }
  0x5c   :  { %1036 = vmatmul.mubr.msk.f32.vlgmr.msra.gmra.mxu0 %vm163_vm0, %v151_v5  ;;  %1044 = vmatprep.subr.mxu1 %v247_v9  ;;  %v630_v34 = vld [vmem:[#allocation13] sm:$0xff]  ;;  %v629_v39 = vld [vmem:[#allocation7 + $0x8] sm:$0xff]  ;;  %v842_v41 = vld [vmem:[#allocation15 + $0x30] sm:$0xff] }
  0x5d   :  { %1045 = vmatpush3.msra.mxu1 %v247_v9  ;;  %1049 = vmatprep.subr.mxu0 %v345_v10  ;;  %v841_v42 = vld [vmem:[#allocation15 + $0x28] sm:$0xff]  ;;  %v840_v44 = vld [vmem:[#allocation15 + $0x20] sm:$0xff]  ;;  %v839_v45 = vld [vmem:[#allocation15 + $0x18] sm:$0xff] }
  0x5e   :  { %1050 = vmatpush3.msra.mxu0 %v345_v10  ;;  %1137 = vset.pattern.permute.xlu0 %v1317_v16  ;;  %v838_v50 = vld [vmem:[#allocation15 + $0x10] sm:$0xff]  ;;  %v952_v51 = vld [vmem:[%s1543_s9] ss:$0 sm:$0xff]  ;;  %v837_v53 = vld [vmem:[#allocation15 + $0x8] sm:$0xff] }
  0x5f   :  { %1051 = vmatprep.subr.mxu0 %v344_v11  ;;  %450 = vperm.xlu1 %1136, %v447_v14   ;;  %v836_v57 = vld [vmem:[#allocation15] sm:$0xff]  ;;  %v732_v5 = vld [vmem:[%s1546_s12 + $0x38] sm:$0xff]  ;;  %v731_v7 = vld [vmem:[%s1546_s12 + $0x30] sm:$0xff] }
  0x60   :  { %1052 = vmatpush3.msra.mxu0 %v344_v11  ;;  %v730_v8 = vld [vmem:[%s1546_s12 + $0x28] sm:$0xff]  ;;  %v729_v9 = vld [vmem:[%s1546_s12 + $0x20] sm:$0xff]  ;;  %v728_v10 = vld [vmem:[%s1546_s12 + $0x18] sm:$0xff] }
  0x61   :  { %1053 = vmatprep.subr.mxu0 %v343_v12  ;;  %v727_v11 = vld [vmem:[%s1546_s12 + $0x10] sm:$0xff] }
  0x62   :  { %1054 = vmatpush3.msra.mxu0 %v343_v12  ;;  %v726_v12 = vld [vmem:[%s1546_s12 + $0x8] sm:$0xff] }
  0x63   :  { %1055 = vmatprep.subr.mxu0 %v342_v13  ;;  %453 = vperm.xlu1 %1136, %v448_v18  }
  0x64   :  { %1056 = vmatpush3.msra.mxu0 %v342_v13  ;;  %v725_v13 = vld [vmem:[%s1546_s12] sm:$0xff] }
  0x65   :  { %1074 = vmatprep.subr.mxu0 %v633_v28 }
  0x67   :  { %439 = vperm.xlu1 %1136, %v434_v23  }
  0x6b   :  { %825 = vperm.xlu1 %1136, %v822_v25  }
  0xda   :  { %v451_v36 = vpop.permute.xlu1 %450 }
  0xdb   :  { %vm455_vm1 = vcmp.eq.s32.totalorder %v451_v36, %v1471_v40 }
  0xdc   :  { %v959_v47 = vsel %vm455_vm1, 1.0, %v1319_v46 }
  0xde   :  { %v454_v38 = vpop.permute.xlu1 %453 }
  0xdf   :  { %vm456_vm7 = vcmp.eq.s32.totalorder %v454_v38, %v1471_v40 }
  0xe0   :  { %v960_v2 = vsel %vm456_vm7, 1.0, %v1319_v46 }
  0xe2   :  { %v1474_v43 = vpop.permute.xlu1 %439 }
  0xe3   :  { %vm442_vm8 = vcmp.eq.s32.totalorder %v1474_v43, %v1471_v40 }
  0xe4   :  { %v958_v6 = vsel %vm442_vm8, 1.0, %v1319_v46 }
  0xe6   :  { %v826_v48 = vpop.permute.xlu1 %825 }
  0xe7   :  { %vm830_vm2 = vcmp.eq.s32.totalorder %v826_v48, %v1471_v40 }
  0xe8   :  { %v971_v52 = vsel %vm830_vm2, 1.0, %v1319_v46 }
 0x11c   :  { %v1037_v17 = vpop.f32.mrf.mxu0 }
 0x11d   :  { %v242_v19 = vadd.f32 %v1037_v17, %v949_v15  ;;  %v965_v17 = vld [vmem:[%s1545_s11] ss:$0 sm:$0xff]  ;;  %s1320_s11 = smov [#allocation16]  }
 0x11e   :  { %v236_v20 = vpop.f32.mrf.mxu0  ;;  %s934_s10 = sshll.u32 %s1320_s11, 4  ;;  %s935_s10 = int_to_ptr.vmem [resolvable:$true] %s934_s10 }
 0x11f   :  { %v237_v21 = vadd.f32 %v949_v15, %v236_v20  ;;  %v246_v24 = vmax.f32 %v242_v19, 0.0  ;;  %s1278_s29 = scalar_lea.vmem %s935_s10, 256  ;;  %p1283_p8 = scmp.lt.s32.totalorder %s935_s10, %s935_s10 }
 0x120   :  { %p1279_p7 = scmp.ne.s32.totalorder %s935_s10, %s1278_s29  ;;  %p1284_p9 = scmp.lt.s32.totalorder %s1278_s29, %s1278_s29 }
 0x121   :  { %v245_v22 = vmax.f32 %v237_v21, 0.0 }
 0x122   :  { %p1285_p10 = por %p1284_p9, %p1283_p8 }
 0x123   :  { %346 = vrot.lane.b32.xlu0 %v245_v22, %s1318_s6  ;;  %1046 = vmatprep.mubr.msk.f32.mxu1 %vm163_vm0, %v245_v22 }
 0x124   :  { %1047 = vmatmul.mubr.msk.f32.vlgmr.msra.gmra.mxu1 %vm163_vm0, %v246_v24  ;;  %p1286_p11 = pnand %p1285_p10, %p1279_p7 }
 0x125   :  { %1064 = vmatprep.mubr.msk.f32.mxu1 %vm465_vm3, %v959_v47 }
 0x127   :  { %348 = vrot.lane.b32.xlu0 %v246_v24, %s1318_s6 }
 0x12b   :  { %436 = vperm.xlu0 %1137, %v433_v26  }
 0x12f   :  { %828 = vperm.xlu0 %1137, %v823_v27   ;;  %v968_v27 = vld [vmem:[%s1547_s13] ss:$0 sm:$0xff] }
 0x195   :  { %v347_v29 = vpop.permute.xlu0 %346 }
 0x196   :  { %1057 = vmatprep.mubr.msk.f32.mxu0 %vm163_vm0, %v347_v29 }
 0x199   :  { %v349_v31 = vpop.permute.xlu0 %348 }
 0x19a   :  { %1058 = vmatmul.mubr.msk.f32.vlgmr.msra.gmra.mxu0 %vm163_vm0, %v349_v31 }
 0x19b   :  { %1075 = vmatpush3.msra.mxu0 %v633_v28  ;;  %1082 = vmatprep.mubr.msk.f32.mxu0 %vm163_vm0, %v628_v30 }
 0x19c   :  { %1076 = vmatprep.subr.mxu0 %v632_v32 }
 0x19d   :  { %1077 = vmatpush3.msra.mxu0 %v632_v32 }
 0x19e   :  { %1078 = vmatprep.subr.mxu0 %v631_v33 }
 0x19f   :  { %1079 = vmatpush3.msra.mxu0 %v631_v33 }
 0x1a0   :  { %1080 = vmatprep.subr.mxu0 %v630_v34 }
 0x1a1   :  { %1081 = vmatpush3.msra.mxu0 %v630_v34 }
 0x1a2   :  { %1104 = vmatprep.subr.mxu0 %v843_v35  ;;  %1083 = vmatmul.mubr.msk.f32.vlgmr.msra.gmra.mxu0 %vm163_vm0, %v629_v39 }
 0x1a3   :  { %1105 = vmatpush3.msra.mxu0 %v843_v35  ;;  %1120 = vmatprep.mubr.msk.f32.mxu0 %vm339_vm4, %v971_v52 }
 0x1a4   :  { %1106 = vmatprep.subr.mxu0 %v842_v41 }
 0x1a5   :  { %1107 = vmatpush3.msra.mxu0 %v842_v41 }
 0x1a6   :  { %1108 = vmatprep.subr.mxu0 %v841_v42  ;;  %v437_v49 = vpop.permute.xlu0 %436 }
 0x1a7   :  { %1109 = vmatpush3.msra.mxu0 %v841_v42  ;;  %vm441_vm6 = vcmp.eq.s32.totalorder %v437_v49, %v1471_v40 }
 0x1a8   :  { %1110 = vmatprep.subr.mxu0 %v840_v44  ;;  %v957_v1 = vsel %vm441_vm6, 1.0, %v1319_v46 }
 0x1a9   :  { %1111 = vmatpush3.msra.mxu0 %v840_v44 }
 0x1aa   :  { %1112 = vmatprep.subr.mxu0 %v839_v45  ;;  %v829_v56 = vpop.permute.xlu0 %828 }
 0x1ab   :  { %1113 = vmatpush3.msra.mxu0 %v839_v45  ;;  %vm831_vm5 = vcmp.eq.s32.totalorder %v829_v56, %v1471_v40 }
 0x1ac   :  { %1114 = vmatprep.subr.mxu0 %v838_v50  ;;  %v972_v60 = vsel %vm831_vm5, 1.0, %v1319_v46 }
 0x1ad   :  { %1115 = vmatpush3.msra.mxu0 %v838_v50 }
 0x1ae   :  { %1116 = vmatprep.subr.mxu0 %v837_v53 }
 0x1af   :  { %1117 = vmatpush3.msra.mxu0 %v837_v53 }
 0x1b0   :  { %1118 = vmatprep.subr.mxu0 %v836_v57 }
 0x1b1   :  { %1119 = vmatpush3.msra.mxu0 %v836_v57 }
 0x1b2   :  { %1121 = vmatmul.mubr.msk.f32.vlgmr.msra.gmra.mxu0 %vm339_vm4, %v972_v60 }
 0x1e4   :  { %v1048_v54 = vpop.f32.mrf.mxu1 }
 0x1e5   :  { %v336_v55 = vadd.f32 %v1048_v54, %v952_v51 }
 0x1e6   :  { %v330_v58 = vpop.f32.mrf.mxu1 }
 0x1e7   :  { %341 = vst.msk [vmem:[#allocation2 + $0x8] sm:$0xff] %vm339_vm4, %v336_v55  ;;  %v331_v59 = vadd.f32 %v952_v51, %v330_v58 }
 0x1e9   :  { %340 = vst.msk [vmem:[#allocation2] sm:$0xff] %vm339_vm4, %v331_v59 }
 0x1ee   :  { %v462_v3 = vld [vmem:[#allocation2 + $0x8] sm:$0xff] }
 0x1f0   :  { %v461_v4 = vld [vmem:[#allocation2] sm:$0xff] }
 0x25a   :  { %v1059_v61 = vpop.f32.mrf.mxu0 }
 0x25b   :  { %430 = vst.msk [vmem:[#allocation3 + $0x8] sm:$0xff] %vm339_vm4, %v1059_v61 }
 0x25c   :  { %v420_v62 = vpop.f32.mrf.mxu0 }
 0x25d   :  { %429 = vst.msk [vmem:[#allocation3] sm:$0xff] %vm339_vm4, %v420_v62 }
 0x262   :  { %v464_v63 = vld [vmem:[#allocation3 + $0x8] sm:$0xff]  ;;  %v1084_v15 = vpop.f32.mrf.mxu0 }
 0x263   :  { %1060 = vmatprep.subr.mxu1 %v464_v63  ;;  %v720_v19 = vadd.f32 %v1084_v15, %v965_v17 }
 0x264   :  { %1061 = vmatpush3.msra.mxu1 %v464_v63  ;;  %v463_v0 = vld [vmem:[#allocation3] sm:$0xff]  ;;  %v714_v20 = vpop.f32.mrf.mxu0 }
 0x265   :  { %1062 = vmatprep.subr.mxu1 %v463_v0  ;;  %v715_v23 = vadd.f32 %v965_v17, %v714_v20 }
 0x266   :  { %1063 = vmatpush3.msra.mxu1 %v463_v0 }
 0x267   :  { %1065 = vmatmul.mubr.msk.f32.vlgmr.msra.gmra.mxu1 %vm465_vm3, %v960_v2  ;;  %1067 = vmatprep.subr.mxu1 %v462_v3 }
 0x268   :  { %1068 = vmatpush3.msra.mxu1 %v462_v3  ;;  %1071 = vmatprep.mubr.msk.f32.mxu1 %vm465_vm3, %v957_v1 }
 0x269   :  { %1069 = vmatprep.subr.mxu1 %v461_v4 }
 0x26a   :  { %1070 = vmatpush3.msra.mxu1 %v461_v4 }
 0x26b   :  { %1072 = vmatmul.mubr.msk.f32.vlgmr.msra.gmra.mxu1 %vm465_vm3, %v958_v6  ;;  %1085 = vmatprep.subr.mxu1 %v732_v5 }
 0x26c   :  { %1086 = vmatpush3.msra.mxu1 %v732_v5 }
 0x26d   :  { %1087 = vmatprep.subr.mxu1 %v731_v7 }
 0x26e   :  { %1088 = vmatpush3.msra.mxu1 %v731_v7 }
 0x26f   :  { %1089 = vmatprep.subr.mxu1 %v730_v8 }
 0x270   :  { %1090 = vmatpush3.msra.mxu1 %v730_v8 }
 0x271   :  { %1091 = vmatprep.subr.mxu1 %v729_v9 }
 0x272   :  { %1092 = vmatpush3.msra.mxu1 %v729_v9  ;;  %v1122_v28 = vpop.f32.mrf.mxu0 }
 0x273   :  { %1093 = vmatprep.subr.mxu1 %v728_v10 }
 0x274   :  { %1094 = vmatpush3.msra.mxu1 %v728_v10  ;;  %v916_v34 = vpop.f32.mrf.mxu0 }
 0x275   :  { %1095 = vmatprep.subr.mxu1 %v727_v11 }
 0x276   :  { %1096 = vmatpush3.msra.mxu1 %v727_v11 }
 0x277   :  { %1097 = vmatprep.subr.mxu1 %v726_v12 }
 0x278   :  { %1098 = vmatpush3.msra.mxu1 %v726_v12 }
 0x279   :  { %1099 = vmatprep.subr.mxu1 %v725_v13 }
 0x27a   :  { %1100 = vmatpush3.msra.mxu1 %v725_v13 }
 0x327   :  { %v1066_v14 = vpop.f32.mrf.mxu1 }
 0x329   :  { %v538_v16 = vpop.f32.mrf.mxu1 }
 0x32b   :  { %v1073_v18 = vpop.f32.mrf.mxu1 }
 0x32c   :  { %v625_v21 = vadd.f32 %v1073_v18, %v1066_v14 }
 0x32d   :  { %v619_v22 = vpop.f32.mrf.mxu1 }
 0x32e   :  { %v620_v24 = vadd.f32 %v619_v22, %v538_v16  ;;  %v724_v26 = vmul.f32 %v720_v19, %v625_v21 }
 0x330   :  { %v723_v25 = vmul.f32 %v715_v23, %v620_v24 }
 0x332   :  { %1101 = vmatprep.mubr.msk.f32.mxu1 %vm339_vm4, %v723_v25 }
 0x333   :  { %1102 = vmatmul.mubr.msk.f32.vlgmr.msra.gmra.mxu1 %vm339_vm4, %v724_v26 }
 0x3f3   :  { %v1103_v29 = vpop.f32.mrf.mxu1 }
 0x3f4   :  { %v819_v30 = vadd.f32 %v1103_v29, %v968_v27 }
 0x3f5   :  { %v813_v31 = vpop.f32.mrf.mxu1 }
 0x3f6   :  { %v926_v32 = vadd.f32 %v1122_v28, %v819_v30  ;;  %v814_v33 = vadd.f32 %v968_v27, %v813_v31 }
 0x3f8   :  { %928 = vst [vmem:[#allocation16 + $0x8] sm:$0xff] %v926_v32  ;;  %v925_v35 = vadd.f32 %v916_v34, %v814_v33 }
 0x3fa   :  { %927 = vst [vmem:[#allocation16] sm:$0xff] %v925_v35 }
 0x3fb   :  { %1289 = shalt.err (!%p1286_p11)
}
 0x3fc   :  { %940 = dma.vmem_to_hbm [thread:$0]  %s935_s10, 256, %s1549_s15, [#allocation6], %s1310_s23, %s1310_s23, %s1311_s24  }
 0x3fd   :  { %1306 = dma.done.wait [#allocation6], 256  }
 0x3fe   :  { %1307 = vsyncadd [#allocation6], 4294967040 }
 0x3ff   :  { %944 = vsyncpa [#allocation5], 1 }
 0x400   :  { %945 = vsyncpa [#allocation8], 1 }
 0x401   :  { %946 = vsyncpa [#allocation11], 1 }
 0x402   :  { %947 = vsyncpa [#allocation14], 1 }
 0x403   :  { %948 = vsyncpa [#allocation6], 1 }

// kernel: tpu_custom_call.1
= control target key start
LH: loop header
LB: loop body
LE: loop exit
PB: predicated region body
PF: predicated region fallthrough
CT: control target
= control target key end

     0   :  { %20 = vsyncpa [#allocation5], 0  ;;  %s1534_s0 = inlined_call_operand.hbm [shape: f32[16,32], index: 0, kind: input, shape index: {}]   ;;  %s1535_s1 = inlined_call_operand.vmem [shape: s32[16,1], index: 1, kind: input, shape index: {}]   ;;  %s1536_s2 = inlined_call_operand.vmem [shape: s32[16,1], index: 2, kind: input, shape index: {}]   ;;  %s1537_s3 = inlined_call_operand.vmem [shape: s32[16,1], index: 3, kind: input, shape index: {}]   ;;  %s1538_s4 = inlined_call_operand.hbm [shape: f32[16,32], index: 4, kind: input, shape index: {}]   ;;  %s1539_s5 = inlined_call_operand.hbm [shape: f32[32,64], index: 5, kind: input, shape index: {}]   ;;  %s1540_s6 = inlined_call_operand.vmem [shape: f32[1,64], index: 6, kind: input, shape index: {}]   ;;  %s1541_s7 = inlined_call_operand.hbm [shape: f32[32,64], index: 7, kind: input, shape index: {}]   ;;  %s1542_s8 = inlined_call_operand.hbm [shape: f32[32,64], index: 8, kind: input, shape index: {}]   ;;  %s1543_s9 = inlined_call_operand.vmem [shape: f32[1,64], index: 9, kind: input, shape index: {}]   ;;  %s1544_s10 = inlined_call_operand.hbm [shape: f32[32,64], index: 10, kind: input, shape index: {}]   ;;  %s1545_s11 = inlined_call_operand.vmem [shape: f32[1,64], index: 11, kind: input, shape index: {}]   ;;  %s1546_s12 = inlined_call_operand.vmem [shape: f32[64,128], index: 12, kind: input, shape index: {}]   ;;  %s1547_s13 = inlined_call_operand.vmem [shape: f32[1,128], index: 13, kind: input, shape index: {}]   ;;  %s1548_s14 = inlined_call_operand.hbm [shape: f32[64,128], index: 14, kind: input, shape index: {}]   ;;  %s1549_s15 = inlined_call_operand.hbm [shape: f32[16,128], index: 15, kind: output, shape index: {}]  }
   0x1   :  { %21 = vsyncpa [#allocation8], 0 }
   0x2   :  { %22 = vsyncpa [#allocation11], 0 }
   0x3   :  { %23 = vsyncpa [#allocation14], 0 }
   0x4   :  { %24 = vsyncpa [#allocation6], 0  ;;  %s1308_s18 = smov [#allocation7]   ;;  %s1309_s20 = smov [#allocation10]  }
   0x5   :  { %s48_s19 = sshll.u32 %s1308_s18, 4  ;;  %s74_s21 = sshll.u32 %s1309_s20, 4  ;;  %s49_s19 = int_to_ptr.vmem [resolvable:$true] %s48_s19  ;;  %s75_s21 = int_to_ptr.vmem [resolvable:$true] %s74_s21 }
   0x6   :  { %s1146_s22 = scalar_lea.vmem %s49_s19, 256  ;;  %p1151_p1 = scmp.lt.s32.totalorder %s49_s19, %s49_s19 }
   0x7   :  { %p1147_p0 = scmp.ne.s32.totalorder %s49_s19, %s1146_s22  ;;  %p1152_p2 = scmp.lt.s32.totalorder %s1146_s22, %s1146_s22 }
   0x9   :  { %p1153_p3 = por %p1152_p2, %p1151_p1 }
   0xb   :  { %p1154_p4 = pnand %p1153_p3, %p1147_p0 }
   0xd   :  { %1157 = shalt.err (!%p1154_p4)
}
   0xe   :  { %s1310_s23 = smov 128   ;;  %s1311_s24 = smov 8  }
   0xf   :  { %54 = dma.hbm_to_vmem [thread:$0]  %s1538_s4, 256, %s49_s19, [#allocation8], %s1310_s23, %s1310_s23, %s1311_s24  }
  0x10   :  { %s1166_s27 = scalar_lea.vmem %s75_s21, 512  ;;  %p1171_p6 = scmp.lt.s32.totalorder %s75_s21, %s75_s21 }
  0x11   :  { %p1167_p5 = scmp.ne.s32.totalorder %s75_s21, %s1166_s27  ;;  %p1172_p7 = scmp.lt.s32.totalorder %s1166_s27, %s1166_s27 }
  0x13   :  { %p1173_p8 = por %p1172_p7, %p1171_p6 }
  0x15   :  { %p1174_p9 = pnand %p1173_p8, %p1167_p5 }
  0x17   :  { %1177 = shalt.err (!%p1174_p9)
}
  0x18   :  { %80 = dma.hbm_to_vmem [thread:$0]  %s1541_s7, 512, %s75_s21, [#allocation11], %s1310_s23, %s1310_s23, %s1311_s24  }
  0x19   :  { %s1312_s30 = smov [#allocation13]   ;;  %s1313_s17 = smov [#allocation4]  }
  0x1a   :  { %s100_s16 = sshll.u32 %s1312_s30, 4  ;;  %s30_s18 = sshll.u32 %s1313_s17, 4  ;;  %s101_s16 = int_to_ptr.vmem [resolvable:$true] %s100_s16  ;;  %s31_s18 = int_to_ptr.vmem [resolvable:$true] %s30_s18 }
  0x1b   :  { %s1186_s4 = scalar_lea.vmem %s101_s16, 512  ;;  %p1191_p11 = scmp.lt.s32.totalorder %s101_s16, %s101_s16 }
  0x1c   :  { %p1187_p10 = scmp.ne.s32.totalorder %s101_s16, %s1186_s4  ;;  %p1192_p12 = scmp.lt.s32.totalorder %s1186_s4, %s1186_s4 }
  0x1e   :  { %p1193_p13 = por %p1192_p12, %p1191_p11 }
  0x20   :  { %p1194_p0 = pnand %p1193_p13, %p1187_p10 }
  0x22   :  { %1197 = shalt.err (!%p1194_p0)
}
  0x23   :  { %106 = dma.hbm_to_vmem [thread:$0]  %s1544_s10, 512, %s101_s16, [#allocation14], %s1310_s23, %s1310_s23, %s1311_s24  }
  0x24   :  { %s1206_s7 = scalar_lea.vmem %s31_s18, 256  ;;  %p1211_p2 = scmp.lt.s32.totalorder %s31_s18, %s31_s18 }
  0x25   :  { %p1207_p1 = scmp.ne.s32.totalorder %s31_s18, %s1206_s7  ;;  %p1212_p3 = scmp.lt.s32.totalorder %s1206_s7, %s1206_s7 }
  0x27   :  { %p1213_p4 = por %p1212_p3, %p1211_p2 }
  0x29   :  { %p1214_p5 = pnand %p1213_p4, %p1207_p1 }
  0x2b   :  { %1217 = shalt.err (!%p1214_p5)
}
  0x2c   :  { %36 = dma.hbm_to_vmem [thread:$0]  %s1534_s0, 256, %s31_s18, [#allocation5], %s1310_s23, %s1310_s23, %s1311_s24  }
  0x2d   :  { %s1314_s25 = smov [#allocation9]   ;;  %s1315_s27 = smov [#allocation12]  }
  0x2e   :  { %s60_s26 = sshll.u32 %s1314_s25, 4  ;;  %s86_s28 = sshll.u32 %s1315_s27, 4  ;;  %s61_s26 = int_to_ptr.vmem [resolvable:$true] %s60_s26  ;;  %s87_s28 = int_to_ptr.vmem [resolvable:$true] %s86_s28 }
  0x2f   :  { %s1226_s10 = scalar_lea.vmem %s61_s26, 512  ;;  %p1231_p7 = scmp.lt.s32.totalorder %s61_s26, %s61_s26 }
  0x30   :  { %p1227_p6 = scmp.ne.s32.totalorder %s61_s26, %s1226_s10  ;;  %p1232_p8 = scmp.lt.s32.totalorder %s1226_s10, %s1226_s10 }
  0x32   :  { %p1233_p9 = por %p1232_p8, %p1231_p7 }
  0x34   :  { %p1234_p10 = pnand %p1233_p9, %p1227_p6 }
  0x36   :  { %1237 = shalt.err (!%p1234_p10)
}
  0x37   :  { %66 = dma.hbm_to_vmem [thread:$0]  %s1539_s5, 512, %s61_s26, [#allocation8], %s1310_s23, %s1310_s23, %s1311_s24  }
  0x38   :  { %s1246_s0 = scalar_lea.vmem %s87_s28, 512  ;;  %p1251_p12 = scmp.lt.s32.totalorder %s87_s28, %s87_s28 }
  0x39   :  { %p1247_p11 = scmp.ne.s32.totalorder %s87_s28, %s1246_s0  ;;  %p1252_p13 = scmp.lt.s32.totalorder %s1246_s0, %s1246_s0 }
  0x3b   :  { %p1253_p0 = por %p1252_p13, %p1251_p12 }
  0x3d   :  { %p1254_p1 = pnand %p1253_p0, %p1247_p11 }
  0x3f   :  { %1257 = shalt.err (!%p1254_p1)
}
  0x40   :  { %92 = dma.hbm_to_vmem [thread:$0]  %s1542_s8, 512, %s87_s28, [#allocation11], %s1310_s23, %s1310_s23, %s1311_s24  }
  0x41   :  { %s1316_s18 = smov [#allocation15]  }
  0x42   :  { %s118_s4 = sshll.u32 %s1316_s18, 4  ;;  %s119_s4 = int_to_ptr.vmem [resolvable:$true] %s118_s4 }
  0x43   :  { %s1266_s19 = scalar_lea.vmem %s119_s4, 1024  ;;  %p1271_p3 = scmp.lt.s32.totalorder %s119_s4, %s119_s4 }
  0x44   :  { %p1267_p2 = scmp.ne.s32.totalorder %s119_s4, %s1266_s19  ;;  %p1272_p4 = scmp.lt.s32.totalorder %s1266_s19, %s1266_s19 }
  0x46   :  { %p1273_p5 = por %p1272_p4, %p1271_p3 }
  0x48   :  { %p1274_p6 = pnand %p1273_p5, %p1267_p2 }
  0x4a   :  { %1277 = shalt.err (!%p1274_p6)
}
  0x4b   :  { %124 = dma.hbm_to_vmem [thread:$0]  %s1548_s14, 1024, %s119_s4, [#allocation14], %s1310_s23, %s1310_s23, %s1311_s24  }
  0x4c   :  { %1298 = dma.done.wait [#allocation5], 256  }
  0x4d   :  { %1299 = vsyncadd [#allocation5], 4294967040 }
  0x4e   :  { %1300 = dma.done.wait [#allocation8], 768  }
  0x4f   :  { %1301 = vsyncadd [#allocation8], 4294966528 }
  0x50   :  { %1302 = dma.done.wait [#allocation11], 1024  }
  0x51   :  { %1303 = vsyncadd [#allocation11], 4294966272 }
  0x52   :  { %1304 = dma.done.wait [#allocation14], 1536  }
  0x53   :  { %1305 = vsyncadd [#allocation14], 4294965760  ;;  %vm163_vm0 = vcmask 261120   ;;  %v155_v0 = vld [vmem:[#allocation9 + $0x18] sm:$0xff]  ;;  %v154_v1 = vld [vmem:[#allocation9 + $0x10] sm:$0xff]  ;;  %v1317_v16 = vmov 0   ;;  %v431_v37 = vlaneseq }
  0x54   :  { %1027 = vmatprep.subr.mxu0 %v155_v0  ;;  %v150_v2 = vld [vmem:[#allocation4] sm:$0xff]  ;;  %v153_v3 = vld [vmem:[#allocation9 + $0x8] sm:$0xff]  ;;  %v250_v6 = vld [vmem:[#allocation10 + $0x18] sm:$0xff]  ;;  %1136 = vset.pattern.permute.xlu1 %v1317_v16  ;;  %v1319_v46 = vmov 0.0   ;;  %vm465_vm3 = vcmask 130048   ;;  %vm339_vm4 = vcmask 523264  }
  0x55   :  { %1028 = vmatpush3.msra.mxu0 %v155_v0  ;;  %1035 = vmatprep.mubr.msk.f32.mxu0 %vm163_vm0, %v150_v2  ;;  %v152_v4 = vld [vmem:[#allocation9] sm:$0xff]  ;;  %v151_v5 = vld [vmem:[#allocation4 + $0x8] sm:$0xff]  ;;  %v249_v7 = vld [vmem:[#allocation10 + $0x10] sm:$0xff]  ;;  %v1471_v40 = vand.u32 127, %v431_v37 }
  0x56   :  { %1029 = vmatprep.subr.mxu0 %v154_v1  ;;  %1038 = vmatprep.subr.mxu1 %v250_v6  ;;  %v248_v8 = vld [vmem:[#allocation10 + $0x8] sm:$0xff]  ;;  %v247_v9 = vld [vmem:[#allocation10] sm:$0xff]  ;;  %v345_v10 = vld [vmem:[#allocation12 + $0x18] sm:$0xff] }
  0x57   :  { %1030 = vmatpush3.msra.mxu0 %v154_v1  ;;  %1039 = vmatpush3.msra.mxu1 %v250_v6  ;;  %v344_v11 = vld [vmem:[#allocation12 + $0x10] sm:$0xff]  ;;  %v343_v12 = vld [vmem:[#allocation12 + $0x8] sm:$0xff]  ;;  %v342_v13 = vld [vmem:[#allocation12] sm:$0xff] }
  0x58   :  { %1031 = vmatprep.subr.mxu0 %v153_v3  ;;  %1040 = vmatprep.subr.mxu1 %v249_v7  ;;  %v447_v14 = vld [vmem:[%s1536_s2] sm:$0xff]  ;;  %v448_v18 = vld [vmem:[%s1536_s2 + $0x8] sm:$0xff]  ;;  %v633_v28 = vld [vmem:[#allocation13 + $0x18] sm:$0xff] }
  0x59   :  { %1032 = vmatpush3.msra.mxu0 %v153_v3  ;;  %1041 = vmatpush3.msra.mxu1 %v249_v7  ;;  %v949_v15 = vld [vmem:[%s1540_s6] ss:$0 sm:$0xff]  ;;  %v434_v23 = vld [vmem:[%s1535_s1 + $0x8] sm:$0xff]  ;;  %s1318_s6 = smov 96   ;;  %v628_v30 = vld [vmem:[#allocation7] sm:$0xff] }
  0x5a   :  { %1033 = vmatprep.subr.mxu0 %v152_v4  ;;  %1042 = vmatprep.subr.mxu1 %v248_v8  ;;  %v822_v25 = vld [vmem:[%s1537_s3] sm:$0xff]  ;;  %v823_v27 = vld [vmem:[%s1537_s3 + $0x8] sm:$0xff]  ;;  %v632_v32 = vld [vmem:[#allocation13 + $0x10] sm:$0xff] }
  0x5b   :  { %1034 = vmatpush3.msra.mxu0 %v152_v4  ;;  %1043 = vmatpush3.msra.mxu1 %v248_v8  ;;  %v433_v26 = vld [vmem:[%s1535_s1] sm:$0xff]  ;;  %v631_v33 = vld [vmem:[#allocation13 + $0x8] sm:$0xff]  ;;  %v843_v35 = vld [vmem:[#allocation15 + $0x38] sm:$0xff] }
  0x5c   :  { %1036 = vmatmul.mubr.msk.f32.vlgmr.msra.gmra.mxu0 %vm163_vm0, %v151_v5  ;;  %1044 = vmatprep.subr.mxu1 %v247_v9  ;;  %v630_v34 = vld [vmem:[#allocation13] sm:$0xff]  ;;  %v629_v39 = vld [vmem:[#allocation7 + $0x8] sm:$0xff]  ;;  %v842_v41 = vld [vmem:[#allocation15 + $0x30] sm:$0xff] }
  0x5d   :  { %1045 = vmatpush3.msra.mxu1 %v247_v9  ;;  %1049 = vmatprep.subr.mxu0 %v345_v10  ;;  %v841_v42 = vld [vmem:[#allocation15 + $0x28] sm:$0xff]  ;;  %v840_v44 = vld [vmem:[#allocation15 + $0x20] sm:$0xff]  ;;  %v839_v45 = vld [vmem:[#allocation15 + $0x18] sm:$0xff] }
  0x5e   :  { %1050 = vmatpush3.msra.mxu0 %v345_v10  ;;  %1137 = vset.pattern.permute.xlu0 %v1317_v16  ;;  %v838_v50 = vld [vmem:[#allocation15 + $0x10] sm:$0xff]  ;;  %v952_v51 = vld [vmem:[%s1543_s9] ss:$0 sm:$0xff]  ;;  %v837_v53 = vld [vmem:[#allocation15 + $0x8] sm:$0xff] }
  0x5f   :  { %1051 = vmatprep.subr.mxu0 %v344_v11  ;;  %450 = vperm.xlu1 %1136, %v447_v14   ;;  %v836_v57 = vld [vmem:[#allocation15] sm:$0xff]  ;;  %v732_v5 = vld [vmem:[%s1546_s12 + $0x38] sm:$0xff]  ;;  %v731_v7 = vld [vmem:[%s1546_s12 + $0x30] sm:$0xff] }
  0x60   :  { %1052 = vmatpush3.msra.mxu0 %v344_v11  ;;  %v730_v8 = vld [vmem:[%s1546_s12 + $0x28] sm:$0xff]  ;;  %v729_v9 = vld [vmem:[%s1546_s12 + $0x20] sm:$0xff]  ;;  %v728_v10 = vld [vmem:[%s1546_s12 + $0x18] sm:$0xff] }
  0x61   :  { %1053 = vmatprep.subr.mxu0 %v343_v12  ;;  %v727_v11 = vld [vmem:[%s1546_s12 + $0x10] sm:$0xff] }
  0x62   :  { %1054 = vmatpush3.msra.mxu0 %v343_v12  ;;  %v726_v12 = vld [vmem:[%s1546_s12 + $0x8] sm:$0xff] }
  0x63   :  { %1055 = vmatprep.subr.mxu0 %v342_v13  ;;  %453 = vperm.xlu1 %1136, %v448_v18  }
  0x64   :  { %1056 = vmatpush3.msra.mxu0 %v342_v13  ;;  %v725_v13 = vld [vmem:[%s1546_s12] sm:$0xff] }
  0x65   :  { %1074 = vmatprep.subr.mxu0 %v633_v28 }
  0x67   :  { %439 = vperm.xlu1 %1136, %v434_v23  }
  0x6b   :  { %825 = vperm.xlu1 %1136, %v822_v25  }
  0xda   :  { %v451_v36 = vpop.permute.xlu1 %450 }
  0xdb   :  { %vm455_vm1 = vcmp.eq.s32.totalorder %v451_v36, %v1471_v40 }
  0xdc   :  { %v959_v47 = vsel %vm455_vm1, 1.0, %v1319_v46 }
  0xde   :  { %v454_v38 = vpop.permute.xlu1 %453 }
  0xdf   :  { %vm456_vm7 = vcmp.eq.s32.totalorder %v454_v38, %v1471_v40 }
  0xe0   :  { %v960_v2 = vsel %vm456_vm7, 1.0, %v1319_v46 }
  0xe2   :  { %v1474_v43 = vpop.permute.xlu1 %439 }
  0xe3   :  { %vm442_vm8 = vcmp.eq.s32.totalorder %v1474_v43, %v1471_v40 }
  0xe4   :  { %v958_v6 = vsel %vm442_vm8, 1.0, %v1319_v46 }
  0xe6   :  { %v826_v48 = vpop.permute.xlu1 %825 }
  0xe7   :  { %vm830_vm2 = vcmp.eq.s32.totalorder %v826_v48, %v1471_v40 }
  0xe8   :  { %v971_v52 = vsel %vm830_vm2, 1.0, %v1319_v46 }
 0x11c   :  { %v1037_v17 = vpop.f32.mrf.mxu0 }
 0x11d   :  { %v242_v19 = vadd.f32 %v1037_v17, %v949_v15  ;;  %v965_v17 = vld [vmem:[%s1545_s11] ss:$0 sm:$0xff]  ;;  %s1320_s11 = smov [#allocation16]  }
 0x11e   :  { %v236_v20 = vpop.f32.mrf.mxu0  ;;  %s934_s10 = sshll.u32 %s1320_s11, 4  ;;  %s935_s10 = int_to_ptr.vmem [resolvable:$true] %s934_s10 }
 0x11f   :  { %v237_v21 = vadd.f32 %v949_v15, %v236_v20  ;;  %v246_v24 = vmax.f32 %v242_v19, 0.0  ;;  %s1278_s29 = scalar_lea.vmem %s935_s10, 256  ;;  %p1283_p8 = scmp.lt.s32.totalorder %s935_s10, %s935_s10 }
 0x120   :  { %p1279_p7 = scmp.ne.s32.totalorder %s935_s10, %s1278_s29  ;;  %p1284_p9 = scmp.lt.s32.totalorder %s1278_s29, %s1278_s29 }
 0x121   :  { %v245_v22 = vmax.f32 %v237_v21, 0.0 }
 0x122   :  { %p1285_p10 = por %p1284_p9, %p1283_p8 }
 0x123   :  { %346 = vrot.lane.b32.xlu0 %v245_v22, %s1318_s6  ;;  %1046 = vmatprep.mubr.msk.f32.mxu1 %vm163_vm0, %v245_v22 }
 0x124   :  { %1047 = vmatmul.mubr.msk.f32.vlgmr.msra.gmra.mxu1 %vm163_vm0, %v246_v24  ;;  %p1286_p11 = pnand %p1285_p10, %p1279_p7 }
 0x125   :  { %1064 = vmatprep.mubr.msk.f32.mxu1 %vm465_vm3, %v959_v47 }
 0x127   :  { %348 = vrot.lane.b32.xlu0 %v246_v24, %s1318_s6 }
 0x12b   :  { %436 = vperm.xlu0 %1137, %v433_v26  }
 0x12f   :  { %828 = vperm.xlu0 %1137, %v823_v27   ;;  %v968_v27 = vld [vmem:[%s1547_s13] ss:$0 sm:$0xff] }
 0x195   :  { %v347_v29 = vpop.permute.xlu0 %346 }
 0x196   :  { %1057 = vmatprep.mubr.msk.f32.mxu0 %vm163_vm0, %v347_v29 }
 0x199   :  { %v349_v31 = vpop.permute.xlu0 %348 }
 0x19a   :  { %1058 = vmatmul.mubr.msk.f32.vlgmr.msra.gmra.mxu0 %vm163_vm0, %v349_v31 }
 0x19b   :  { %1075 = vmatpush3.msra.mxu0 %v633_v28  ;;  %1082 = vmatprep.mubr.msk.f32.mxu0 %vm163_vm0, %v628_v30 }
 0x19c   :  { %1076 = vmatprep.subr.mxu0 %v632_v32 }
 0x19d   :  { %1077 = vmatpush3.msra.mxu0 %v632_v32 }
 0x19e   :  { %1078 = vmatprep.subr.mxu0 %v631_v33 }
 0x19f   :  { %1079 = vmatpush3.msra.mxu0 %v631_v33 }
 0x1a0   :  { %1080 = vmatprep.subr.mxu0 %v630_v34 }
 0x1a1   :  { %1081 = vmatpush3.msra.mxu0 %v630_v34 }
 0x1a2   :  { %1104 = vmatprep.subr.mxu0 %v843_v35  ;;  %1083 = vmatmul.mubr.msk.f32.vlgmr.msra.gmra.mxu0 %vm163_vm0, %v629_v39 }
 0x1a3   :  { %1105 = vmatpush3.msra.mxu0 %v843_v35  ;;  %1120 = vmatprep.mubr.msk.f32.mxu0 %vm339_vm4, %v971_v52 }
 0x1a4   :  { %1106 = vmatprep.subr.mxu0 %v842_v41 }
 0x1a5   :  { %1107 = vmatpush3.msra.mxu0 %v842_v41 }
 0x1a6   :  { %1108 = vmatprep.subr.mxu0 %v841_v42  ;;  %v437_v49 = vpop.permute.xlu0 %436 }
 0x1a7   :  { %1109 = vmatpush3.msra.mxu0 %v841_v42  ;;  %vm441_vm6 = vcmp.eq.s32.totalorder %v437_v49, %v1471_v40 }
 0x1a8   :  { %1110 = vmatprep.subr.mxu0 %v840_v44  ;;  %v957_v1 = vsel %vm441_vm6, 1.0, %v1319_v46 }
 0x1a9   :  { %1111 = vmatpush3.msra.mxu0 %v840_v44 }
 0x1aa   :  { %1112 = vmatprep.subr.mxu0 %v839_v45  ;;  %v829_v56 = vpop.permute.xlu0 %828 }
 0x1ab   :  { %1113 = vmatpush3.msra.mxu0 %v839_v45  ;;  %vm831_vm5 = vcmp.eq.s32.totalorder %v829_v56, %v1471_v40 }
 0x1ac   :  { %1114 = vmatprep.subr.mxu0 %v838_v50  ;;  %v972_v60 = vsel %vm831_vm5, 1.0, %v1319_v46 }
 0x1ad   :  { %1115 = vmatpush3.msra.mxu0 %v838_v50 }
 0x1ae   :  { %1116 = vmatprep.subr.mxu0 %v837_v53 }
 0x1af   :  { %1117 = vmatpush3.msra.mxu0 %v837_v53 }
 0x1b0   :  { %1118 = vmatprep.subr.mxu0 %v836_v57 }
 0x1b1   :  { %1119 = vmatpush3.msra.mxu0 %v836_v57 }
 0x1b2   :  { %1121 = vmatmul.mubr.msk.f32.vlgmr.msra.gmra.mxu0 %vm339_vm4, %v972_v60 }
 0x1e4   :  { %v1048_v54 = vpop.f32.mrf.mxu1 }
 0x1e5   :  { %v336_v55 = vadd.f32 %v1048_v54, %v952_v51 }
 0x1e6   :  { %v330_v58 = vpop.f32.mrf.mxu1 }
 0x1e7   :  { %341 = vst.msk [vmem:[#allocation2 + $0x8] sm:$0xff] %vm339_vm4, %v336_v55  ;;  %v331_v59 = vadd.f32 %v952_v51, %v330_v58 }
 0x1e9   :  { %340 = vst.msk [vmem:[#allocation2] sm:$0xff] %vm339_vm4, %v331_v59 }
 0x1ee   :  { %v462_v3 = vld [vmem:[#allocation2 + $0x8] sm:$0xff] }
 0x1f0   :  { %v461_v4 = vld [vmem:[#allocation2] sm:$0xff] }
 0x25a   :  { %v1059_v61 = vpop.f32.mrf.mxu0 }
 0x25b   :  { %430 = vst.msk [vmem:[#allocation3 + $0x8] sm:$0xff] %vm339_vm4, %v1059_v61 }
 0x25c   :  { %v420_v62 = vpop.f32.mrf.mxu0 }
 0x25d   :  { %429 = vst.msk [vmem:[#allocation3] sm:$0xff] %vm339_vm4, %v420_v62 }
 0x262   :  { %v464_v63 = vld [vmem:[#allocation3 + $0x8] sm:$0xff]  ;;  %v1084_v15 = vpop.f32.mrf.mxu0 }
 0x263   :  { %1060 = vmatprep.subr.mxu1 %v464_v63  ;;  %v720_v19 = vadd.f32 %v1084_v15, %v965_v17 }
 0x264   :  { %1061 = vmatpush3.msra.mxu1 %v464_v63  ;;  %v463_v0 = vld [vmem:[#allocation3] sm:$0xff]  ;;  %v714_v20 = vpop.f32.mrf.mxu0 }
 0x265   :  { %1062 = vmatprep.subr.mxu1 %v463_v0  ;;  %v715_v23 = vadd.f32 %v965_v17, %v714_v20 }
 0x266   :  { %1063 = vmatpush3.msra.mxu1 %v463_v0 }
 0x267   :  { %1065 = vmatmul.mubr.msk.f32.vlgmr.msra.gmra.mxu1 %vm465_vm3, %v960_v2  ;;  %1067 = vmatprep.subr.mxu1 %v462_v3 }
 0x268   :  { %1068 = vmatpush3.msra.mxu1 %v462_v3  ;;  %1071 = vmatprep.mubr.msk.f32.mxu1 %vm465_vm3, %v957_v1 }
 0x269   :  { %1069 = vmatprep.subr.mxu1 %v461_v4 }
 0x26a   :  { %1070 = vmatpush3.msra.mxu1 %v461_v4 }
 0x26b   :  { %1072 = vmatmul.mubr.msk.f32.vlgmr.msra.gmra.mxu1 %vm465_vm3, %v958_v6  ;;  %1085 = vmatprep.subr.mxu1 %v732_v5 }
 0x26c   :  { %1086 = vmatpush3.msra.mxu1 %v732_v5 }
 0x26d   :  { %1087 = vmatprep.subr.mxu1 %v731_v7 }
 0x26e   :  { %1088 = vmatpush3.msra.mxu1 %v731_v7 }
 0x26f   :  { %1089 = vmatprep.subr.mxu1 %v730_v8 }
 0x270   :  { %1090 = vmatpush3.msra.mxu1 %v730_v8 }
 0x271   :  { %1091 = vmatprep.subr.mxu1 %v729_v9 }
 0x272   :  { %1092 = vmatpush3.msra.mxu1 %v729_v9  ;;  %v1122_v28 = vpop.f32.mrf.mxu0 }
 0x273   :  { %1093 = vmatprep.subr.mxu1 %v728_v10 }
 0x274   :  { %1094 = vmatpush3.msra.mxu1 %v728_v10  ;;  %v916_v34 = vpop.f32.mrf.mxu0 }
 0x275   :  { %1095 = vmatprep.subr.mxu1 %v727_v11 }
 0x276   :  { %1096 = vmatpush3.msra.mxu1 %v727_v11 }
 0x277   :  { %1097 = vmatprep.subr.mxu1 %v726_v12 }
 0x278   :  { %1098 = vmatpush3.msra.mxu1 %v726_v12 }
 0x279   :  { %1099 = vmatprep.subr.mxu1 %v725_v13 }
 0x27a   :  { %1100 = vmatpush3.msra.mxu1 %v725_v13 }
 0x327   :  { %v1066_v14 = vpop.f32.mrf.mxu1 }
 0x329   :  { %v538_v16 = vpop.f32.mrf.mxu1 }
 0x32b   :  { %v1073_v18 = vpop.f32.mrf.mxu1 }
 0x32c   :  { %v625_v21 = vadd.f32 %v1073_v18, %v1066_v14 }
 0x32d   :  { %v619_v22 = vpop.f32.mrf.mxu1 }
 0x32e   :  { %v620_v24 = vadd.f32 %v619_v22, %v538_v16  ;;  %v724_v26 = vmul.f32 %v720_v19, %v625_v21 }
 0x330   :  { %v723_v25 = vmul.f32 %v715_v23, %v620_v24 }
 0x332   :  { %1101 = vmatprep.mubr.msk.f32.mxu1 %vm339_vm4, %v723_v25 }
 0x333   :  { %1102 = vmatmul.mubr.msk.f32.vlgmr.msra.gmra.mxu1 %vm339_vm4, %v724_v26 }
 0x3f3   :  { %v1103_v29 = vpop.f32.mrf.mxu1 }
 0x3f4   :  { %v819_v30 = vadd.f32 %v1103_v29, %v968_v27 }
 0x3f5   :  { %v813_v31 = vpop.f32.mrf.mxu1 }
 0x3f6   :  { %v926_v32 = vadd.f32 %v1122_v28, %v819_v30  ;;  %v814_v33 = vadd.f32 %v968_v27, %v813_v31 }
 0x3f8   :  { %928 = vst [vmem:[#allocation16 + $0x8] sm:$0xff] %v926_v32  ;;  %v925_v35 = vadd.f32 %v916_v34, %v814_v33 }
 0x3fa   :  { %927 = vst [vmem:[#allocation16] sm:$0xff] %v925_v35 }
 0x3fb   :  { %1289 = shalt.err (!%p1286_p11)
}
 0x3fc   :  { %940 = dma.vmem_to_hbm [thread:$0]  %s935_s10, 256, %s1549_s15, [#allocation6], %s1310_s23, %s1310_s23, %s1311_s24  }
 0x3fd   :  { %1306 = dma.done.wait [#allocation6], 256  }
 0x3fe   :  { %1307 = vsyncadd [#allocation6], 4294967040 }
 0x3ff   :  { %944 = vsyncpa [#allocation5], 1 }
 0x400   :  { %945 = vsyncpa [#allocation8], 1 }
 0x401   :  { %946 = vsyncpa [#allocation11], 1 }
 0x402   :  { %947 = vsyncpa [#allocation14], 1 }
 0x403   :  { %948 = vsyncpa [#allocation6], 1 }

</bundles_post_ra>
